<compile_context>
chip_gen: v7x
topology: tpu7x:2x2x1
jax: 0.10.0
libtpu: 0.0.40
codegen_flags: <defaults>
</compile_context>

<pallas_src>
import functools

import jax
import jax.numpy as jnp
from jax.experimental import pallas as pl
from jax.experimental.pallas import tpu as pltpu


def _ms_attention_kernel(x_a_ref, x_b_ref, wq_ref, wkv_ref, wo_ref, bo_ref,
                         o_ref, *, heads, dim_head, scale):
    # Shapes (leading batch dim squeezed out by the BlockSpec):
    #   x_a_ref: (N, D)      query tokens for this batch element
    #   x_b_ref: (M, D)      key/value tokens
    #   wq_ref:  (D, inner)  wkv_ref: (D, 2*inner)
    #   wo_ref:  (inner, D)  bo_ref:  (1, D)
    #   o_ref:   (N, D)
    inner = heads * dim_head

    xa = x_a_ref[...].astype(jnp.float32)
    xb = x_b_ref[...].astype(jnp.float32)

    # Fused projections (one wide MXU pass each).  Scale folded into q once.
    q = jnp.dot(xa, wq_ref[...], preferred_element_type=jnp.float32) * scale  # (N, inner)
    kv = jnp.dot(xb, wkv_ref[...], preferred_element_type=jnp.float32)        # (M, 2*inner)
    k = kv[:, :inner]          # lane-aligned split (inner % 128 == 0)
    v = kv[:, inner:]

    head_outs = []
    for h in range(heads):                       # static unroll over heads
        lo, hi = h * dim_head, (h + 1) * dim_head
        qh = q[:, lo:hi]                         # (N, Dh)
        kh = k[:, lo:hi]                         # (M, Dh)
        vh = v[:, lo:hi]                         # (M, Dh)

        dots = jnp.dot(qh, kh.T, preferred_element_type=jnp.float32)          # (N, M)
        dots = dots - jnp.max(dots, axis=-1, keepdims=True)
        p = jnp.exp(dots)
        denom = jnp.sum(p, axis=-1, keepdims=True)
        p = p * pl.reciprocal(denom, approx=True)                             # EUP slot

        head_outs.append(jnp.dot(p, vh, preferred_element_type=jnp.float32))  # (N, Dh)

    attn_out = jnp.concatenate(head_outs, axis=-1)                            # (N, inner)
    y = jnp.dot(attn_out, wo_ref[...], preferred_element_type=jnp.float32)    # (N, D)
    y = y + bo_ref[...]                                                       # (1, D) broadcast
    o_ref[...] = y.astype(o_ref.dtype)


def ms_attention_pallas(x_a, x_b, w_q, w_kv, w_out, b_out, *,
                        heads, dim_head, scale):
    B, N, D = x_a.shape
    Bb, M, Db = x_b.shape
    assert Bb == B and Db == D
    inner = heads * dim_head
    assert w_q.shape == (D, inner)
    assert w_kv.shape == (D, 2 * inner)
    assert w_out.shape == (inner, D)
    b_out2 = b_out.reshape(1, D)

    kernel = functools.partial(_ms_attention_kernel, heads=heads,
                               dim_head=dim_head, scale=scale)

    return pl.pallas_call(
        kernel,
        out_shape=jax.ShapeDtypeStruct((B, N, D), x_a.dtype),
        grid_spec=pltpu.PrefetchScalarGridSpec(
            num_scalar_prefetch=0,
            grid=(B,),
            in_specs=[
                pl.BlockSpec((None, N, D), lambda b: (b, 0, 0)),     # x_A (batch squeezed)
                pl.BlockSpec((None, M, D), lambda b: (b, 0, 0)),     # x_B
                pl.BlockSpec((D, inner), lambda b: (0, 0)),          # W_q    (resident)
                pl.BlockSpec((D, 2 * inner), lambda b: (0, 0)),      # W_kv   (resident)
                pl.BlockSpec((inner, D), lambda b: (0, 0)),          # W_out  (resident)
                pl.BlockSpec((1, D), lambda b: (0, 0)),              # b_out
            ],
            out_specs=pl.BlockSpec((None, N, D), lambda b: (b, 0, 0)),
        ),
        compiler_params=pltpu.CompilerParams(
            dimension_semantics=("parallel",),
        ),
    )(x_a, x_b, w_q, w_kv, w_out, b_out2)


class MSAttentionPallas:
    """JAX/Pallas equivalent of the PyTorch MS_Attention module (inference)."""

    def __init__(self, dim, heads=8, dim_head=64, dropout=0.0, *, key):
        inner = heads * dim_head
        self.dim = dim
        self.heads = heads
        self.dim_head = dim_head
        self.scale = float(dim) ** -0.5          # matches PyTorch: dim ** -0.5
        self.dropout = dropout                   # p=0.0 -> identity at inference

        kq, kkv, kw, kb = jax.random.split(key, 4)
        lim_in = 1.0 / (dim ** 0.5)              # nn.Linear default init range
        lim_out = 1.0 / (inner ** 0.5)
        self.w_q = jax.random.uniform(kq, (dim, inner), jnp.float32,
                                      -lim_in, lim_in)
        # to_kv fused weight; torch chunk(2, dim=-1): first half -> k, second -> v
        self.w_kv = jax.random.uniform(kkv, (dim, 2 * inner), jnp.float32,
                                       -lim_in, lim_in)
        self.w_out = jax.random.uniform(kw, (inner, dim), jnp.float32,
                                        -lim_out, lim_out)
        self.b_out = jax.random.uniform(kb, (dim,), jnp.float32,
                                        -lim_out, lim_out)

    def __call__(self, x_A, x_B, mask=None):
        # TODO(synk): mask path not implemented in the Pallas kernel.
        assert mask is None, "mask path not implemented"
        return ms_attention_pallas(
            x_A, x_B, self.w_q, self.w_kv, self.w_out, self.b_out,
            heads=self.heads, dim_head=self.dim_head, scale=self.scale)


def _ms_attention_ref(x_a, x_b, w_q, w_kv, w_out, b_out,
                      heads, dim_head, scale):
    """Pure-JAX reference mirroring the PyTorch forward."""
    B, N, _ = x_a.shape
    inner = heads * dim_head
    q = x_a @ w_q
    kv = x_b @ w_kv
    k, v = kv[..., :inner], kv[..., inner:]

    def split_heads(t):
        b, n, _ = t.shape
        return t.reshape(b, n, heads, dim_head).transpose(0, 2, 1, 3)

    q, k, v = map(split_heads, (q, k, v))                    # (B, H, n, Dh)
    dots = jnp.einsum('bhid,bhjd->bhij', q, k) * scale
    attn = jax.nn.softmax(dots, axis=-1)
    out = jnp.einsum('bhij,bhjd->bhid', attn, v)
    out = out.transpose(0, 2, 1, 3).reshape(B, N, inner)
    return out @ w_out + b_out


if __name__ == "__main__":
    key = jax.random.PRNGKey(0)
    k_mod, k_a, k_b = jax.random.split(key, 3)

    # Small shapes, lane-dense output (dim = 128); module-default heads/dim_head.
    B, N, M, DIM = 2, 16, 16, 128
    HEADS, DIM_HEAD = 8, 64

    x_A = jax.random.normal(k_a, (B, N, DIM), dtype=jnp.float32)
    x_B = jax.random.normal(k_b, (B, M, DIM), dtype=jnp.float32)

    attn = MSAttentionPallas(DIM, heads=HEADS, dim_head=DIM_HEAD, dropout=0.0,
                             key=k_mod)

    out = attn(x_A, x_B)
    jax.block_until_ready(out)

    ref = _ms_attention_ref(x_A, x_B, attn.w_q, attn.w_kv,
                            attn.w_out, attn.b_out,
                            HEADS, DIM_HEAD, attn.scale)
    assert out.shape == (B, N, DIM)
    assert jnp.allclose(out, ref, atol=2e-2, rtol=2e-2), (
        float(jnp.max(jnp.abs(out - ref))))

    print("KERNEL_OK")
</pallas_src>

<mosaic_0001>
module attributes {stable_mosaic.version = 11 : i64} {
  func.func @_ms_attention_kernel(%arg0: i32, %arg1: memref<1x16x128xf32, #tpu.memory_space<vmem>>, %arg2: memref<1x16x128xf32, #tpu.memory_space<vmem>>, %arg3: memref<128x512xf32, #tpu.memory_space<vmem>>, %arg4: memref<128x1024xf32, #tpu.memory_space<vmem>>, %arg5: memref<512x128xf32, #tpu.memory_space<vmem>>, %arg6: memref<1x128xf32, #tpu.memory_space<vmem>>, %arg7: memref<1x16x128xf32, #tpu.memory_space<vmem>>) attributes {dimension_semantics = [#tpu.dimension_semantics<parallel>], iteration_bounds = array<i64: 2>, scalar_prefetch = 0 : i64, scratch_operands = 0 : i64, tpu.core_type = #tpu.core_type<tc>, window_params = [{transform_indices = @transform_0, window_bounds = array<i64: 1, 16, 128>}, {transform_indices = @transform_1, window_bounds = array<i64: 1, 16, 128>}, {pipeline_mode = #tpu.pipeline_mode<synchronous>, transform_indices = @transform_2, window_bounds = array<i64: 128, 512>}, {pipeline_mode = #tpu.pipeline_mode<synchronous>, transform_indices = @transform_3, window_bounds = array<i64: 128, 1024>}, {pipeline_mode = #tpu.pipeline_mode<synchronous>, transform_indices = @transform_4, window_bounds = array<i64: 512, 128>}, {pipeline_mode = #tpu.pipeline_mode<synchronous>, transform_indices = @transform_5, window_bounds = array<i64: 1, 128>}, {transform_indices = @transform_6, window_bounds = array<i64: 1, 16, 128>}]} {
    %c0 = arith.constant 0 : index
    %c0_0 = arith.constant 0 : index
    %c0_1 = arith.constant 0 : index
    %0 = vector.load %arg1[%c0, %c0_0, %c0_1] : memref<1x16x128xf32, #tpu.memory_space<vmem>>, vector<1x16x128xf32>
    %1 = vector.shape_cast %0 : vector<1x16x128xf32> to vector<16x128xf32>
    %c0_2 = arith.constant 0 : index
    %c0_3 = arith.constant 0 : index
    %c0_4 = arith.constant 0 : index
    %2 = vector.load %arg2[%c0_2, %c0_3, %c0_4] : memref<1x16x128xf32, #tpu.memory_space<vmem>>, vector<1x16x128xf32>
    %3 = vector.shape_cast %2 : vector<1x16x128xf32> to vector<16x128xf32>
    %c0_5 = arith.constant 0 : index
    %c0_6 = arith.constant 0 : index
    %4 = vector.load %arg3[%c0_5, %c0_6] : memref<128x512xf32, #tpu.memory_space<vmem>>, vector<128x512xf32>
    %cst = arith.constant dense<0.000000e+00> : vector<16x512xf32>
    %5 = tpu.matmul %1, %4, %cst {dimension_numbers = #tpu.dot_dimension_numbers<[1], [0], [0], [1], [0, 0, 1, 1], [], []>} : vector<16x128xf32>, vector<128x512xf32>, vector<16x512xf32> -> vector<16x512xf32>
    %cst_7 = arith.constant 0.0883883461 : f32
    %6 = vector.broadcast %cst_7 : f32 to vector<16x512xf32>
    %7 = arith.mulf %5, %6 : vector<16x512xf32>
    %c0_8 = arith.constant 0 : index
    %c0_9 = arith.constant 0 : index
    %8 = vector.load %arg4[%c0_8, %c0_9] : memref<128x1024xf32, #tpu.memory_space<vmem>>, vector<128x1024xf32>
    %cst_10 = arith.constant dense<0.000000e+00> : vector<16x1024xf32>
    %9 = tpu.matmul %3, %8, %cst_10 {dimension_numbers = #tpu.dot_dimension_numbers<[1], [0], [0], [1], [0, 0, 1, 1], [], []>} : vector<16x128xf32>, vector<128x1024xf32>, vector<16x1024xf32> -> vector<16x1024xf32>
    %10 = vector.extract_strided_slice %9 {offsets = [0, 0], sizes = [16, 512], strides = [1, 1]} : vector<16x1024xf32> to vector<16x512xf32>
    %11 = vector.extract_strided_slice %9 {offsets = [0, 512], sizes = [16, 512], strides = [1, 1]} : vector<16x1024xf32> to vector<16x512xf32>
    %12 = vector.extract_strided_slice %7 {offsets = [0, 0], sizes = [16, 64], strides = [1, 1]} : vector<16x512xf32> to vector<16x64xf32>
    %13 = vector.extract_strided_slice %10 {offsets = [0, 0], sizes = [16, 64], strides = [1, 1]} : vector<16x512xf32> to vector<16x64xf32>
    %14 = vector.extract_strided_slice %11 {offsets = [0, 0], sizes = [16, 64], strides = [1, 1]} : vector<16x512xf32> to vector<16x64xf32>
    %15 = tpu.transpose %13, [1, 0] : vector<16x64xf32> -> vector<64x16xf32>
    %cst_11 = arith.constant dense<0.000000e+00> : vector<16x16xf32>
    %16 = tpu.matmul %12, %15, %cst_11 {dimension_numbers = #tpu.dot_dimension_numbers<[1], [0], [0], [1], [0, 0, 1, 1], [], []>} : vector<16x64xf32>, vector<64x16xf32>, vector<16x16xf32> -> vector<16x16xf32>
    %cst_12 = arith.constant dense<0xFF800000> : vector<16xf32>
    %17 = vector.multi_reduction <maximumf>, %16, %cst_12 [1] : vector<16x16xf32> to vector<16xf32>
    %18 = vector.shape_cast %17 : vector<16xf32> to vector<16x1xf32>
    %19 = vector.broadcast %18 : vector<16x1xf32> to vector<16x16xf32>
    %20 = arith.subf %16, %19 : vector<16x16xf32>
    %21 = math.exp %20 : vector<16x16xf32>
    %cst_13 = arith.constant dense<0.000000e+00> : vector<16xf32>
    %22 = vector.multi_reduction <add>, %21, %cst_13 [1] : vector<16x16xf32> to vector<16xf32>
    %23 = vector.shape_cast %22 : vector<16xf32> to vector<16x1xf32>
    %24 = tpu.reciprocal %23 {approx = true} : vector<16x1xf32> -> vector<16x1xf32>
    %25 = vector.broadcast %24 : vector<16x1xf32> to vector<16x16xf32>
    %26 = arith.mulf %21, %25 : vector<16x16xf32>
    %cst_14 = arith.constant dense<0.000000e+00> : vector<16x64xf32>
    %27 = tpu.matmul %26, %14, %cst_14 {dimension_numbers = #tpu.dot_dimension_numbers<[1], [0], [0], [1], [0, 0, 1, 1], [], []>} : vector<16x16xf32>, vector<16x64xf32>, vector<16x64xf32> -> vector<16x64xf32>
    %28 = vector.extract_strided_slice %7 {offsets = [0, 64], sizes = [16, 64], strides = [1, 1]} : vector<16x512xf32> to vector<16x64xf32>
    %29 = vector.extract_strided_slice %10 {offsets = [0, 64], sizes = [16, 64], strides = [1, 1]} : vector<16x512xf32> to vector<16x64xf32>
    %30 = vector.extract_strided_slice %11 {offsets = [0, 64], sizes = [16, 64], strides = [1, 1]} : vector<16x512xf32> to vector<16x64xf32>
    %31 = tpu.transpose %29, [1, 0] : vector<16x64xf32> -> vector<64x16xf32>
    %cst_15 = arith.constant dense<0.000000e+00> : vector<16x16xf32>
    %32 = tpu.matmul %28, %31, %cst_15 {dimension_numbers = #tpu.dot_dimension_numbers<[1], [0], [0], [1], [0, 0, 1, 1], [], []>} : vector<16x64xf32>, vector<64x16xf32>, vector<16x16xf32> -> vector<16x16xf32>
    %cst_16 = arith.constant dense<0xFF800000> : vector<16xf32>
    %33 = vector.multi_reduction <maximumf>, %32, %cst_16 [1] : vector<16x16xf32> to vector<16xf32>
    %34 = vector.shape_cast %33 : vector<16xf32> to vector<16x1xf32>
    %35 = vector.broadcast %34 : vector<16x1xf32> to vector<16x16xf32>
    %36 = arith.subf %32, %35 : vector<16x16xf32>
    %37 = math.exp %36 : vector<16x16xf32>
    %cst_17 = arith.constant dense<0.000000e+00> : vector<16xf32>
    %38 = vector.multi_reduction <add>, %37, %cst_17 [1] : vector<16x16xf32> to vector<16xf32>
    %39 = vector.shape_cast %38 : vector<16xf32> to vector<16x1xf32>
    %40 = tpu.reciprocal %39 {approx = true} : vector<16x1xf32> -> vector<16x1xf32>
    %41 = vector.broadcast %40 : vector<16x1xf32> to vector<16x16xf32>
    %42 = arith.mulf %37, %41 : vector<16x16xf32>
    %cst_18 = arith.constant dense<0.000000e+00> : vector<16x64xf32>
    %43 = tpu.matmul %42, %30, %cst_18 {dimension_numbers = #tpu.dot_dimension_numbers<[1], [0], [0], [1], [0, 0, 1, 1], [], []>} : vector<16x16xf32>, vector<16x64xf32>, vector<16x64xf32> -> vector<16x64xf32>
    %44 = vector.extract_strided_slice %7 {offsets = [0, 128], sizes = [16, 64], strides = [1, 1]} : vector<16x512xf32> to vector<16x64xf32>
    %45 = vector.extract_strided_slice %10 {offsets = [0, 128], sizes = [16, 64], strides = [1, 1]} : vector<16x512xf32> to vector<16x64xf32>
    %46 = vector.extract_strided_slice %11 {offsets = [0, 128], sizes = [16, 64], strides = [1, 1]} : vector<16x512xf32> to vector<16x64xf32>
    %47 = tpu.transpose %45, [1, 0] : vector<16x64xf32> -> vector<64x16xf32>
    %cst_19 = arith.constant dense<0.000000e+00> : vector<16x16xf32>
    %48 = tpu.matmul %44, %47, %cst_19 {dimension_numbers = #tpu.dot_dimension_numbers<[1], [0], [0], [1], [0, 0, 1, 1], [], []>} : vector<16x64xf32>, vector<64x16xf32>, vector<16x16xf32> -> vector<16x16xf32>
    %cst_20 = arith.constant dense<0xFF800000> : vector<16xf32>
    %49 = vector.multi_reduction <maximumf>, %48, %cst_20 [1] : vector<16x16xf32> to vector<16xf32>
    %50 = vector.shape_cast %49 : vector<16xf32> to vector<16x1xf32>
    %51 = vector.broadcast %50 : vector<16x1xf32> to vector<16x16xf32>
    %52 = arith.subf %48, %51 : vector<16x16xf32>
    %53 = math.exp %52 : vector<16x16xf32>
    %cst_21 = arith.constant dense<0.000000e+00> : vector<16xf32>
    %54 = vector.multi_reduction <add>, %53, %cst_21 [1] : vector<16x16xf32> to vector<16xf32>
    %55 = vector.shape_cast %54 : vector<16xf32> to vector<16x1xf32>
    %56 = tpu.reciprocal %55 {approx = true} : vector<16x1xf32> -> vector<16x1xf32>
    %57 = vector.broadcast %56 : vector<16x1xf32> to vector<16x16xf32>
    %58 = arith.mulf %53, %57 : vector<16x16xf32>
    %cst_22 = arith.constant dense<0.000000e+00> : vector<16x64xf32>
    %59 = tpu.matmul %58, %46, %cst_22 {dimension_numbers = #tpu.dot_dimension_numbers<[1], [0], [0], [1], [0, 0, 1, 1], [], []>} : vector<16x16xf32>, vector<16x64xf32>, vector<16x64xf32> -> vector<16x64xf32>
    %60 = vector.extract_strided_slice %7 {offsets = [0, 192], sizes = [16, 64], strides = [1, 1]} : vector<16x512xf32> to vector<16x64xf32>
    %61 = vector.extract_strided_slice %10 {offsets = [0, 192], sizes = [16, 64], strides = [1, 1]} : vector<16x512xf32> to vector<16x64xf32>
    %62 = vector.extract_strided_slice %11 {offsets = [0, 192], sizes = [16, 64], strides = [1, 1]} : vector<16x512xf32> to vector<16x64xf32>
    %63 = tpu.transpose %61, [1, 0] : vector<16x64xf32> -> vector<64x16xf32>
    %cst_23 = arith.constant dense<0.000000e+00> : vector<16x16xf32>
    %64 = tpu.matmul %60, %63, %cst_23 {dimension_numbers = #tpu.dot_dimension_numbers<[1], [0], [0], [1], [0, 0, 1, 1], [], []>} : vector<16x64xf32>, vector<64x16xf32>, vector<16x16xf32> -> vector<16x16xf32>
    %cst_24 = arith.constant dense<0xFF800000> : vector<16xf32>
    %65 = vector.multi_reduction <maximumf>, %64, %cst_24 [1] : vector<16x16xf32> to vector<16xf32>
    %66 = vector.shape_cast %65 : vector<16xf32> to vector<16x1xf32>
    %67 = vector.broadcast %66 : vector<16x1xf32> to vector<16x16xf32>
    %68 = arith.subf %64, %67 : vector<16x16xf32>
    %69 = math.exp %68 : vector<16x16xf32>
    %cst_25 = arith.constant dense<0.000000e+00> : vector<16xf32>
    %70 = vector.multi_reduction <add>, %69, %cst_25 [1] : vector<16x16xf32> to vector<16xf32>
    %71 = vector.shape_cast %70 : vector<16xf32> to vector<16x1xf32>
    %72 = tpu.reciprocal %71 {approx = true} : vector<16x1xf32> -> vector<16x1xf32>
    %73 = vector.broadcast %72 : vector<16x1xf32> to vector<16x16xf32>
    %74 = arith.mulf %69, %73 : vector<16x16xf32>
    %cst_26 = arith.constant dense<0.000000e+00> : vector<16x64xf32>
    %75 = tpu.matmul %74, %62, %cst_26 {dimension_numbers = #tpu.dot_dimension_numbers<[1], [0], [0], [1], [0, 0, 1, 1], [], []>} : vector<16x16xf32>, vector<16x64xf32>, vector<16x64xf32> -> vector<16x64xf32>
    %76 = vector.extract_strided_slice %7 {offsets = [0, 256], sizes = [16, 64], strides = [1, 1]} : vector<16x512xf32> to vector<16x64xf32>
    %77 = vector.extract_strided_slice %10 {offsets = [0, 256], sizes = [16, 64], strides = [1, 1]} : vector<16x512xf32> to vector<16x64xf32>
    %78 = vector.extract_strided_slice %11 {offsets = [0, 256], sizes = [16, 64], strides = [1, 1]} : vector<16x512xf32> to vector<16x64xf32>
    %79 = tpu.transpose %77, [1, 0] : vector<16x64xf32> -> vector<64x16xf32>
    %cst_27 = arith.constant dense<0.000000e+00> : vector<16x16xf32>
    %80 = tpu.matmul %76, %79, %cst_27 {dimension_numbers = #tpu.dot_dimension_numbers<[1], [0], [0], [1], [0, 0, 1, 1], [], []>} : vector<16x64xf32>, vector<64x16xf32>, vector<16x16xf32> -> vector<16x16xf32>
    %cst_28 = arith.constant dense<0xFF800000> : vector<16xf32>
    %81 = vector.multi_reduction <maximumf>, %80, %cst_28 [1] : vector<16x16xf32> to vector<16xf32>
    %82 = vector.shape_cast %81 : vector<16xf32> to vector<16x1xf32>
    %83 = vector.broadcast %82 : vector<16x1xf32> to vector<16x16xf32>
    %84 = arith.subf %80, %83 : vector<16x16xf32>
    %85 = math.exp %84 : vector<16x16xf32>
    %cst_29 = arith.constant dense<0.000000e+00> : vector<16xf32>
    %86 = vector.multi_reduction <add>, %85, %cst_29 [1] : vector<16x16xf32> to vector<16xf32>
    %87 = vector.shape_cast %86 : vector<16xf32> to vector<16x1xf32>
    %88 = tpu.reciprocal %87 {approx = true} : vector<16x1xf32> -> vector<16x1xf32>
    %89 = vector.broadcast %88 : vector<16x1xf32> to vector<16x16xf32>
    %90 = arith.mulf %85, %89 : vector<16x16xf32>
    %cst_30 = arith.constant dense<0.000000e+00> : vector<16x64xf32>
    %91 = tpu.matmul %90, %78, %cst_30 {dimension_numbers = #tpu.dot_dimension_numbers<[1], [0], [0], [1], [0, 0, 1, 1], [], []>} : vector<16x16xf32>, vector<16x64xf32>, vector<16x64xf32> -> vector<16x64xf32>
    %92 = vector.extract_strided_slice %7 {offsets = [0, 320], sizes = [16, 64], strides = [1, 1]} : vector<16x512xf32> to vector<16x64xf32>
    %93 = vector.extract_strided_slice %10 {offsets = [0, 320], sizes = [16, 64], strides = [1, 1]} : vector<16x512xf32> to vector<16x64xf32>
    %94 = vector.extract_strided_slice %11 {offsets = [0, 320], sizes = [16, 64], strides = [1, 1]} : vector<16x512xf32> to vector<16x64xf32>
    %95 = tpu.transpose %93, [1, 0] : vector<16x64xf32> -> vector<64x16xf32>
    %cst_31 = arith.constant dense<0.000000e+00> : vector<16x16xf32>
    %96 = tpu.matmul %92, %95, %cst_31 {dimension_numbers = #tpu.dot_dimension_numbers<[1], [0], [0], [1], [0, 0, 1, 1], [], []>} : vector<16x64xf32>, vector<64x16xf32>, vector<16x16xf32> -> vector<16x16xf32>
    %cst_32 = arith.constant dense<0xFF800000> : vector<16xf32>
    %97 = vector.multi_reduction <maximumf>, %96, %cst_32 [1] : vector<16x16xf32> to vector<16xf32>
    %98 = vector.shape_cast %97 : vector<16xf32> to vector<16x1xf32>
    %99 = vector.broadcast %98 : vector<16x1xf32> to vector<16x16xf32>
    %100 = arith.subf %96, %99 : vector<16x16xf32>
    %101 = math.exp %100 : vector<16x16xf32>
    %cst_33 = arith.constant dense<0.000000e+00> : vector<16xf32>
    %102 = vector.multi_reduction <add>, %101, %cst_33 [1] : vector<16x16xf32> to vector<16xf32>
    %103 = vector.shape_cast %102 : vector<16xf32> to vector<16x1xf32>
    %104 = tpu.reciprocal %103 {approx = true} : vector<16x1xf32> -> vector<16x1xf32>
    %105 = vector.broadcast %104 : vector<16x1xf32> to vector<16x16xf32>
    %106 = arith.mulf %101, %105 : vector<16x16xf32>
    %cst_34 = arith.constant dense<0.000000e+00> : vector<16x64xf32>
    %107 = tpu.matmul %106, %94, %cst_34 {dimension_numbers = #tpu.dot_dimension_numbers<[1], [0], [0], [1], [0, 0, 1, 1], [], []>} : vector<16x16xf32>, vector<16x64xf32>, vector<16x64xf32> -> vector<16x64xf32>
    %108 = vector.extract_strided_slice %7 {offsets = [0, 384], sizes = [16, 64], strides = [1, 1]} : vector<16x512xf32> to vector<16x64xf32>
    %109 = vector.extract_strided_slice %10 {offsets = [0, 384], sizes = [16, 64], strides = [1, 1]} : vector<16x512xf32> to vector<16x64xf32>
    %110 = vector.extract_strided_slice %11 {offsets = [0, 384], sizes = [16, 64], strides = [1, 1]} : vector<16x512xf32> to vector<16x64xf32>
    %111 = tpu.transpose %109, [1, 0] : vector<16x64xf32> -> vector<64x16xf32>
    %cst_35 = arith.constant dense<0.000000e+00> : vector<16x16xf32>
    %112 = tpu.matmul %108, %111, %cst_35 {dimension_numbers = #tpu.dot_dimension_numbers<[1], [0], [0], [1], [0, 0, 1, 1], [], []>} : vector<16x64xf32>, vector<64x16xf32>, vector<16x16xf32> -> vector<16x16xf32>
    %cst_36 = arith.constant dense<0xFF800000> : vector<16xf32>
    %113 = vector.multi_reduction <maximumf>, %112, %cst_36 [1] : vector<16x16xf32> to vector<16xf32>
    %114 = vector.shape_cast %113 : vector<16xf32> to vector<16x1xf32>
    %115 = vector.broadcast %114 : vector<16x1xf32> to vector<16x16xf32>
    %116 = arith.subf %112, %115 : vector<16x16xf32>
    %117 = math.exp %116 : vector<16x16xf32>
    %cst_37 = arith.constant dense<0.000000e+00> : vector<16xf32>
    %118 = vector.multi_reduction <add>, %117, %cst_37 [1] : vector<16x16xf32> to vector<16xf32>
    %119 = vector.shape_cast %118 : vector<16xf32> to vector<16x1xf32>
    %120 = tpu.reciprocal %119 {approx = true} : vector<16x1xf32> -> vector<16x1xf32>
    %121 = vector.broadcast %120 : vector<16x1xf32> to vector<16x16xf32>
    %122 = arith.mulf %117, %121 : vector<16x16xf32>
    %cst_38 = arith.constant dense<0.000000e+00> : vector<16x64xf32>
    %123 = tpu.matmul %122, %110, %cst_38 {dimension_numbers = #tpu.dot_dimension_numbers<[1], [0], [0], [1], [0, 0, 1, 1], [], []>} : vector<16x16xf32>, vector<16x64xf32>, vector<16x64xf32> -> vector<16x64xf32>
    %124 = vector.extract_strided_slice %7 {offsets = [0, 448], sizes = [16, 64], strides = [1, 1]} : vector<16x512xf32> to vector<16x64xf32>
    %125 = vector.extract_strided_slice %10 {offsets = [0, 448], sizes = [16, 64], strides = [1, 1]} : vector<16x512xf32> to vector<16x64xf32>
    %126 = vector.extract_strided_slice %11 {offsets = [0, 448], sizes = [16, 64], strides = [1, 1]} : vector<16x512xf32> to vector<16x64xf32>
    %127 = tpu.transpose %125, [1, 0] : vector<16x64xf32> -> vector<64x16xf32>
    %cst_39 = arith.constant dense<0.000000e+00> : vector<16x16xf32>
    %128 = tpu.matmul %124, %127, %cst_39 {dimension_numbers = #tpu.dot_dimension_numbers<[1], [0], [0], [1], [0, 0, 1, 1], [], []>} : vector<16x64xf32>, vector<64x16xf32>, vector<16x16xf32> -> vector<16x16xf32>
    %cst_40 = arith.constant dense<0xFF800000> : vector<16xf32>
    %129 = vector.multi_reduction <maximumf>, %128, %cst_40 [1] : vector<16x16xf32> to vector<16xf32>
    %130 = vector.shape_cast %129 : vector<16xf32> to vector<16x1xf32>
    %131 = vector.broadcast %130 : vector<16x1xf32> to vector<16x16xf32>
    %132 = arith.subf %128, %131 : vector<16x16xf32>
    %133 = math.exp %132 : vector<16x16xf32>
    %cst_41 = arith.constant dense<0.000000e+00> : vector<16xf32>
    %134 = vector.multi_reduction <add>, %133, %cst_41 [1] : vector<16x16xf32> to vector<16xf32>
    %135 = vector.shape_cast %134 : vector<16xf32> to vector<16x1xf32>
    %136 = tpu.reciprocal %135 {approx = true} : vector<16x1xf32> -> vector<16x1xf32>
    %137 = vector.broadcast %136 : vector<16x1xf32> to vector<16x16xf32>
    %138 = arith.mulf %133, %137 : vector<16x16xf32>
    %cst_42 = arith.constant dense<0.000000e+00> : vector<16x64xf32>
    %139 = tpu.matmul %138, %126, %cst_42 {dimension_numbers = #tpu.dot_dimension_numbers<[1], [0], [0], [1], [0, 0, 1, 1], [], []>} : vector<16x16xf32>, vector<16x64xf32>, vector<16x64xf32> -> vector<16x64xf32>
    %140 = tpu.concatenate %27, %43, %59, %75, %91, %107, %123, %139 in 1 : vector<16x64xf32>, vector<16x64xf32>, vector<16x64xf32>, vector<16x64xf32>, vector<16x64xf32>, vector<16x64xf32>, vector<16x64xf32>, vector<16x64xf32> -> vector<16x512xf32>
    %c0_43 = arith.constant 0 : index
    %c0_44 = arith.constant 0 : index
    %141 = vector.load %arg5[%c0_43, %c0_44] : memref<512x128xf32, #tpu.memory_space<vmem>>, vector<512x128xf32>
    %cst_45 = arith.constant dense<0.000000e+00> : vector<16x128xf32>
    %142 = tpu.matmul %140, %141, %cst_45 {dimension_numbers = #tpu.dot_dimension_numbers<[1], [0], [0], [1], [0, 0, 1, 1], [], []>} : vector<16x512xf32>, vector<512x128xf32>, vector<16x128xf32> -> vector<16x128xf32>
    %c0_46 = arith.constant 0 : index
    %c0_47 = arith.constant 0 : index
    %143 = vector.load %arg6[%c0_46, %c0_47] : memref<1x128xf32, #tpu.memory_space<vmem>>, vector<1x128xf32>
    %144 = vector.broadcast %143 : vector<1x128xf32> to vector<16x128xf32>
    %145 = arith.addf %142, %144 : vector<16x128xf32>
    %c0_48 = arith.constant 0 : index
    %c0_49 = arith.constant 0 : index
    %c0_50 = arith.constant 0 : index
    %146 = vector.load %arg7[%c0_48, %c0_49, %c0_50] : memref<1x16x128xf32, #tpu.memory_space<vmem>>, vector<1x16x128xf32>
    %147 = vector.shape_cast %146 : vector<1x16x128xf32> to vector<16x128xf32>
    %148 = vector.shape_cast %145 : vector<16x128xf32> to vector<1x16x128xf32>
    tpu.vector_store %arg7[%c0_48, %c0_49, %c0_50], %148 {strides = array<i32>} : memref<1x16x128xf32, #tpu.memory_space<vmem>>, vector<1x16x128xf32>,
    return
  }
  func.func @transform_0(%arg0: i32) -> (i32, i32, i32) {
    %c0_i32 = arith.constant 0 : i32
    %c0_i32_0 = arith.constant 0 : i32
    %c0_i32_1 = arith.constant 0 : i32
    return %arg0, %c0_i32, %c0_i32_0 : i32, i32, i32
  }
  func.func @transform_1(%arg0: i32) -> (i32, i32, i32) {
    %c0_i32 = arith.constant 0 : i32
    %c0_i32_0 = arith.constant 0 : i32
    %c0_i32_1 = arith.constant 0 : i32
    return %arg0, %c0_i32, %c0_i32_0 : i32, i32, i32
  }
  func.func @transform_2(%arg0: i32) -> (i32, i32) {
    %c0_i32 = arith.constant 0 : i32
    %c0_i32_0 = arith.constant 0 : i32
    %c0_i32_1 = arith.constant 0 : i32
    return %c0_i32, %c0_i32_0 : i32, i32
  }
  func.func @transform_3(%arg0: i32) -> (i32, i32) {
    %c0_i32 = arith.constant 0 : i32
    %c0_i32_0 = arith.constant 0 : i32
    %c0_i32_1 = arith.constant 0 : i32
    return %c0_i32, %c0_i32_0 : i32, i32
  }
  func.func @transform_4(%arg0: i32) -> (i32, i32) {
    %c0_i32 = arith.constant 0 : i32
    %c0_i32_0 = arith.constant 0 : i32
    %c0_i32_1 = arith.constant 0 : i32
    return %c0_i32, %c0_i32_0 : i32, i32
  }
  func.func @transform_5(%arg0: i32) -> (i32, i32) {
    %c0_i32 = arith.constant 0 : i32
    %c0_i32_0 = arith.constant 0 : i32
    %c0_i32_1 = arith.constant 0 : i32
    return %c0_i32, %c0_i32_0 : i32, i32
  }
  func.func @transform_6(%arg0: i32) -> (i32, i32, i32) {
    %c0_i32 = arith.constant 0 : i32
    %c0_i32_0 = arith.constant 0 : i32
    %c0_i32_1 = arith.constant 0 : i32
    return %arg0, %c0_i32, %c0_i32_0 : i32, i32, i32
  }
}

</mosaic_0001>

<bundles_post_ra>
// kernel: tpu_custom_call.1
= control target key start
LH: loop header
LB: loop body
LE: loop exit
PB: predicated region body
PF: predicated region fallthrough
CT: control target
= control target key end

     0   :  { %s4806_s0 = inlined_call_operand.hbm [shape: f32[2,16,128], index: 0, kind: input, shape index: {}]   ;;  %s4807_s1 = inlined_call_operand.hbm [shape: f32[2,16,128], index: 1, kind: input, shape index: {}]   ;;  %s4808_s2 = inlined_call_operand.hbm [shape: f32[128,512], index: 2, kind: input, shape index: {}]   ;;  %s4809_s3 = inlined_call_operand.hbm [shape: f32[128,1024], index: 3, kind: input, shape index: {}]   ;;  %s4810_s4 = inlined_call_operand.hbm [shape: f32[512,128], index: 4, kind: input, shape index: {}]   ;;  %s4811_s5 = inlined_call_operand.vmem [shape: f32[1,128], index: 5, kind: input, shape index: {}]   ;;  %s4812_s6 = inlined_call_operand.hbm [shape: f32[2,16,128], index: 6, kind: output, shape index: {}]  }
   0x1   :  { %4820 = sst [smem:[#allocation18_spill]] %s4806_s0 }
   0x2   :  { %4821 = sst [smem:[#allocation19_spill]] %s4808_s2 }
   0x3   :  { %4822 = sst [smem:[#allocation20_spill]] %s4809_s3 }
   0x4   :  { %4823 = sst [smem:[#allocation21_spill]] %s4810_s4 }
   0x5   :  { %11 = vsyncpa [#allocation3], 0 }
   0x6   :  { %13 = vsyncpa [#allocation3 + $0x1], 0 }
   0x7   :  { %14 = vsyncpa [#allocation6], 0 }
   0x8   :  { %16 = vsyncpa [#allocation6 + $0x1], 0 }
   0x9   :  { %17 = vsyncpa [#allocation9], 0 }
   0xa   :  { %18 = vsyncpa [#allocation4], 0 }
   0xb   :  { %20 = vsyncpa [#allocation4 + $0x1], 0  ;;  %s4145_s21 = smov 0   ;;  %s4147_s22 = smov 0  }
   0xc   :  { %s4149_s23 = smov 0   ;;  %s4151_s24 = smov 0  }
   0xd LB: > { %s4166_s25 = sadd.s32 4294967295, %s4092_s24   ;;  %s2990_s26 = sadd.s32 4294967294, %s4092_s24   ;;  %s4092_s24 = sphi %s4151_s24, %s4853_s24   ;;  %s4088_s23 = sphi %s4149_s23, %s4852_s23   ;;  %s4084_s22 = sphi %s4147_s22, %s4851_s22   ;;  %s4080_s21 = sphi %s4145_s21, %s4850_s21  }
   0xe   : > { %p46_p0 = scmp.ne.s32.totalorder %s4084_s22, %s4080_s21  ;;  %p4813_p1 = scmp.eq.s32.totalorder %s4166_s25, 0 }
   0xf   : > { %p186_p3 = scmp.eq.s32.totalorder %s2990_s26, 1  ;;  %p2991_p5 = scmp.ge.s32.totalorder %s4092_s24, 1 }
  0x10   : > { %p4175_p4 = por %p4813_p1, %p46_p0  ;;  %p193_p7 = scmp.lt.s32.totalorder %s4092_s24, 3 }
  0x11   : > { %p4180_p6 = por %p186_p3, %p46_p0  ;;  %s4094_s30 = smov [#allocation7]  }
  0x12   : > { %s4824_s27 = scalar_select %p4175_p4, 1, 0 }
  0x13   : > { %s4825_s28 = scalar_select %p4180_p6, 1, 0 }
  0x14   : > { %p4185_p8 = pnand %p2991_p5, %p193_p7  ;;  %s205_s7 = sshll.u32 %s4094_s30, 4  ;;  %s4189_s7 = int_to_ptr.vmem [resolvable:$true] %s205_s7 }
  0x15   : > { %s4095_s9 = smov [#allocation8]   ;;  %s4828_s2 = sld [smem:[#allocation19_spill]] }
  0x16   : > { %s4826_s29 = scalar_select %p4185_p8, 1, 0 }
  0x17   : > { %p3672_p9 = pneg %p4185_p8  ;;  %s218_s10 = sshll.u32 %s4095_s9, 4  ;;  %s4200_s10 = int_to_ptr.vmem [resolvable:$true] %s218_s10 }
  0x19   : > { %p4196_p11 = pnand %p3672_p9, %p4813_p1 }
  0x1b   : > { %s3870_s13 = scalar_lea.hbm %s4828_s2, 8192  ;;  %p4210_p13 = pneg %p4196_p11 }
  0x1c   : > { %p3871_p12 = scmp.ne.s32.totalorder %s4828_s2, %s3870_s13  ;;  %p3877_p5 = scmp.lt.u32.totalorder %s3870_s13, %s4828_s2 }
  0x1e   : > { %p3873_p0 = pnand %p4210_p13, %p3871_p12 }
  0x20   : > { %p3874_p3 = pneg %p3873_p0 }
  0x22   : > { %p3879_p7 = pnand %p3877_p5, %p3874_p3 }
  0x24   : > { %3882 = shalt.err (!%p3879_p7)
}
  0x25   : > { %s3883_s19 = scalar_lea.vmem %s4189_s7, 8192  ;;  %p3891_p2 = scmp.lt.s32.totalorder %s4189_s7, %s4189_s7 }
  0x26   : > { %p3884_p9 = scmp.ne.s32.totalorder %s4189_s7, %s3883_s19  ;;  %p3892_p6 = scmp.lt.s32.totalorder %s3883_s19, %s3883_s19 }
  0x28   : > { %p3886_p10 = pnand %p3884_p9, %p4210_p13  ;;  %p3893_p12 = por %p3892_p6, %p3891_p2 }
  0x2a   : > { %p3887_p1 = pneg %p3886_p10 }
  0x2c   : > { %p3894_p0 = pnand %p3893_p12, %p3887_p1 }
  0x2e   : > { %3897 = shalt.err (!%p3894_p0)
}
  0x2f   : > { %s4096_s20 = smov 512   ;;  %s4097_s26 = smov 32  }
  0x30   : > { %3675 = dma.hbm_to_vmem [thread:$0]  (!%p4196_p11), %s4828_s2, 8192, %s4189_s7, [#allocation6], %s4096_s20, %s4096_s20, %s4097_s26  }
  0x31   : > { %s4830_s3 = sld [smem:[#allocation20_spill]] }
  0x37   : > { %s3898_s13 = scalar_lea.hbm %s4830_s3, 16384 }
  0x38   : > { %p3899_p2 = scmp.ne.s32.totalorder %s4830_s3, %s3898_s13  ;;  %p3905_p10 = scmp.lt.u32.totalorder %s3898_s13, %s4830_s3 }
  0x3a   : > { %p3901_p1 = pnand %p3899_p2, %p4210_p13 }
  0x3c   : > { %p3902_p6 = pneg %p3901_p1 }
  0x3e   : > { %p3907_p3 = pnand %p3905_p10, %p3902_p6 }
  0x40   : > { %3910 = shalt.err (!%p3907_p3)
}
  0x41   : > { %s3911_s7 = scalar_lea.vmem %s4200_s10, 16384  ;;  %p3919_p12 = scmp.lt.s32.totalorder %s4200_s10, %s4200_s10 }
  0x42   : > { %p3912_p5 = scmp.ne.s32.totalorder %s4200_s10, %s3911_s7  ;;  %p3920_p0 = scmp.lt.s32.totalorder %s3911_s7, %s3911_s7 }
  0x44   : > { %p3914_p7 = pnand %p3912_p5, %p4210_p13  ;;  %p3921_p2 = por %p3920_p0, %p3919_p12 }
  0x46   : > { %p3915_p9 = pneg %p3914_p7 }
  0x48   : > { %p3922_p1 = pnand %p3921_p2, %p3915_p9 }
  0x4a   : > { %3925 = shalt.err (!%p3922_p1)
}
  0x4b   : > { %s4098_s19 = smov 1024   ;;  %s4099_s20 = smov 64  }
  0x4c   : > { %3678 = dma.hbm_to_vmem [thread:$0]  (!%p4196_p11), %s4830_s3, 16384, %s4200_s10, [#allocation9], %s4098_s19, %s4098_s19, %s4099_s20  }
  0x4d   : > { %s4100_s9 = smov [#allocation10]   ;;  %s4831_s4 = sld [smem:[#allocation21_spill]] }
  0x4e   : > { %s231_s11 = sshll.u32 %s4100_s9, 4  ;;  %s232_s11 = int_to_ptr.vmem [resolvable:$true] %s231_s11 }
  0x53   : > { %s3926_s14 = scalar_lea.hbm %s4831_s4, 8192 }
  0x54   : > { %p3927_p6 = scmp.ne.s32.totalorder %s4831_s4, %s3926_s14  ;;  %p3933_p5 = scmp.lt.u32.totalorder %s3926_s14, %s4831_s4 }
  0x56   : > { %p3929_p10 = pnand %p3927_p6, %p4210_p13 }
  0x58   : > { %p3930_p3 = pneg %p3929_p10 }
  0x5a   : > { %p3935_p7 = pnand %p3933_p5, %p3930_p3 }
  0x5c   : > { %3938 = shalt.err (!%p3935_p7)
}
  0x5d   : > { %s3939_s10 = scalar_lea.vmem %s232_s11, 8192  ;;  %p3947_p2 = scmp.lt.s32.totalorder %s232_s11, %s232_s11 }
  0x5e   : > { %p3940_p9 = scmp.ne.s32.totalorder %s232_s11, %s3939_s10  ;;  %p3948_p1 = scmp.lt.s32.totalorder %s3939_s10, %s3939_s10 }
  0x60   : > { %p3942_p12 = pnand %p3940_p9, %p4210_p13  ;;  %p3949_p4 = por %p3948_p1, %p3947_p2 }
  0x62   : > { %p3943_p0 = pneg %p3942_p12 }
  0x64   : > { %p3950_p8 = pnand %p3949_p4, %p3943_p0 }
  0x66   : > { %3953 = shalt.err (!%p3950_p8)
}
  0x67   : > { %s4816_s19 = smov 128   ;;  %s4818_s16 = smov 8  }
  0x68   : > { %3681 = dma.hbm_to_vmem [thread:$0]  (!%p4196_p11), %s4831_s4, 8192, %s232_s11, [#allocation9], %s4816_s19, %s4816_s19, %s4818_s16  }
  0x69   : > { %s4276_s30 = sadd.s32 1, %s4092_s24   ;;  %s33_s12 = sadd.s32 1, %s4088_s23 }
  0x6a   : > { %s30_s9 = ssub.s32 %s4092_s24, %s4276_s30  ;;  %p40_p8 = scmp.ne.s32.totalorder %s4088_s23, %s4084_s22 }
  0x6b   : > { %p31_p4 = scmp.eq.s32.totalorder %s30_s9, 0  ;;  %p41_p13 = scmp.eq.s32.totalorder %s4092_s24, 0 }
  0x6c   : > { %p3696_p6 = scmp.lt.s32.totalorder %s4092_s24, 2  ;;  %p4833_p3 = scmp.eq.s32.totalorder %s4166_s25, 1 }
  0x6d   : > { %s4286_s13 = scalar_select %p31_p4, %s4088_s23, %s33_s12  }
  0x6e   : > { %p42_p10 = por %p41_p13, %p40_p8  ;;  %p4290_p5 = por %p4833_p3, %p40_p8 }
  0x6f   : > { %4832 = sst [smem:[#allocation17_spill]] %s4286_s13  ;;  %s248_s14 = sand.u32 1, %s4088_s23  }
  0x70   : > { %s3063_s15 = sshll.u32 %s4092_s24, 8  ;;  %s4296_s11 = sshll.u32 %s248_s14, 4 }
  0x71   : > { %s4835_s0 = sld [smem:[#allocation18_spill]]  ;;  %s252_s10 = scalar_lea.vmem [#allocation2], %s4296_s11 }
  0x72   : > { %s259_s20 = sshll.u32 %s252_s10, 4  ;;  %p4304_p11 = pnand %p3696_p6, %p42_p10  ;;  %s4308_s20 = int_to_ptr.vmem [resolvable:$true] %s259_s20 }
  0x73   : > { %s4313_s17 = scalar_lea.hbm %s4807_s1, %s3063_s15  ;;  %s4315_s18 = scalar_lea.sflag [#allocation3], %s248_s14 }
  0x74   : > { %p3956_p9 = pneg %p4304_p11 }
  0x77   : > { %s4301_s7 = scalar_lea.hbm %s4835_s0, %s3063_s15  ;;  %s3959_s2 = scalar_lea.hbm %s4835_s0, 512 }
  0x78   : > { %s3954_s19 = scalar_lea.hbm %s4301_s7, 256  ;;  %p3960_p2 = scmp.lt.u32.totalorder %s4301_s7, %s4835_s0 }
  0x79   : > { %p3955_p7 = scmp.ne.s32.totalorder %s4301_s7, %s3954_s19  ;;  %p3961_p1 = scmp.lt.u32.totalorder %s3959_s2, %s3954_s19 }
  0x7a   : > { %p3963_p8 = scmp.lt.u32.totalorder %s3954_s19, %s4301_s7 }
  0x7b   : > { %p3957_p12 = pnand %p3956_p9, %p3955_p7  ;;  %p3962_p4 = por %p3961_p1, %p3960_p2 }
  0x7d   : > { %p3958_p0 = pneg %p3957_p12  ;;  %p3964_p13 = por %p3963_p8, %p3962_p4 }
  0x7f   : > { %p3965_p6 = pnand %p3964_p13, %p3958_p0 }
  0x81   : > { %3968 = shalt.err (!%p3965_p6)
}
  0x82   : > { %s3969_s14 = scalar_lea.vmem %s4308_s20, 256  ;;  %s4103_s16 = smov [#allocation2]  }
  0x83   : > { %p3970_p10 = scmp.ne.s32.totalorder %s4308_s20, %s3969_s14  ;;  %s3974_s15 = sshll.u32 %s4103_s16, 4  ;;  %s3975_s15 = int_to_ptr.vmem [resolvable:$false] %s3974_s15 }
  0x84   : > { %s3976_s3 = scalar_lea.vmem %s3975_s15, 512  ;;  %p3977_p12 = scmp.lt.s32.totalorder %s4308_s20, %s3975_s15 }
  0x85   : > { %p3972_p3 = pnand %p3970_p10, %p3956_p9  ;;  %p3978_p2 = scmp.lt.s32.totalorder %s3976_s3, %s3969_s14 }
  0x87   : > { %p3973_p7 = pneg %p3972_p3  ;;  %p3979_p1 = por %p3978_p2, %p3977_p12 }
  0x89   : > { %p3980_p4 = pnand %p3979_p1, %p3973_p7 }
  0x8b   : > { %3983 = shalt.err (!%p3980_p4)
}
  0x8c   : > { %s4837_s2 = smov 8   ;;  %s4838_s4 = smov 128  }
  0x8d   : > { %3685 = dma.hbm_to_vmem [thread:$0]  (!%p4304_p11), %s4301_s7, 256, %s4308_s20, %s4315_s18, %s4838_s4, %s4838_s4, %s4837_s2  }
  0x8e   : > { %s273_s19 = scalar_lea.vmem [#allocation5], %s4296_s11  ;;  %s269_s12 = sand.u32 1, %s4092_s24  }
  0x8f   : > { %s280_s9 = sshll.u32 %s273_s19, 4  ;;  %s4350_s10 = scalar_lea.sflag [#allocation6], %s269_s12  ;;  %s4348_s9 = int_to_ptr.vmem [resolvable:$true] %s280_s9 }
  0x90   : > { %s3984_s14 = scalar_lea.hbm %s4313_s17, 256  ;;  %s3989_s3 = scalar_lea.hbm %s4807_s1, 512 }
  0x91   : > { %p3985_p0 = scmp.ne.s32.totalorder %s4313_s17, %s3984_s14  ;;  %p3990_p6 = scmp.lt.u32.totalorder %s4313_s17, %s4807_s1 }
  0x92   : > { %p3991_p10 = scmp.lt.u32.totalorder %s3989_s3, %s3984_s14  ;;  %p3993_p7 = scmp.lt.u32.totalorder %s3984_s14, %s4313_s17 }
  0x93   : > { %p3987_p8 = pnand %p3985_p0, %p3956_p9 }
  0x94   : > { %p3992_p3 = por %p3991_p10, %p3990_p6 }
  0x95   : > { %p3988_p13 = pneg %p3987_p8 }
  0x96   : > { %p3994_p12 = por %p3993_p7, %p3992_p3 }
  0x98   : > { %p3995_p2 = pnand %p3994_p12, %p3988_p13 }
  0x9a   : > { %3998 = shalt.err (!%p3995_p2)
}
  0x9b   : > { %s3999_s11 = scalar_lea.vmem %s4348_s9, 256  ;;  %s4104_s7 = smov [#allocation5]  }
  0x9c   : > { %p4000_p1 = scmp.ne.s32.totalorder %s4348_s9, %s3999_s11  ;;  %s4004_s20 = sshll.u32 %s4104_s7, 4  ;;  %s4005_s20 = int_to_ptr.vmem [resolvable:$false] %s4004_s20 }
  0x9d   : > { %s4006_s0 = scalar_lea.vmem %s4005_s20, 512  ;;  %p4007_p8 = scmp.lt.s32.totalorder %s4348_s9, %s4005_s20 }
  0x9e   : > { %p4002_p4 = pnand %p4000_p1, %p3956_p9  ;;  %p4008_p6 = scmp.lt.s32.totalorder %s4006_s0, %s3999_s11 }
  0xa0   : > { %p4003_p0 = pneg %p4002_p4  ;;  %p4009_p10 = por %p4008_p6, %p4007_p8 }
  0xa2   : > { %p4010_p3 = pnand %p4009_p10, %p4003_p0 }
  0xa4   : > { %4013 = shalt.err (!%p4010_p3)
}
  0xa5   : > { %3688 = dma.hbm_to_vmem [thread:$0]  (!%p4304_p11), %s4313_s17, 256, %s4348_s9, %s4350_s10, %s4838_s4, %s4838_s4, %s4837_s2  }
  0xa6   : > { %p4839_p9 = scmp.ne.s32.totalorder %s4826_s29, 0 }
  0xa7   : > { %s4382_s13 = sand.u32 (!%p4839_p9), 1, %s4084_s22   ;;  %p4840_p13 = scmp.ne.s32.totalorder (!%p4839_p9), %s4824_s27, 0 }
  0xa8   : > { %292 = sbr.rel (%p4839_p9) target bundleno = 4955 (0x135b), region = 44  ;;  %s4385_s18 = sshll.u32 (!%p4839_p9), %s4382_s13, 4 }
  0xa9   : > { %s295_s26 = scalar_lea.sflag (!%p4839_p9), [#allocation3], %s4382_s13  ;;  %s298_s19 = scalar_lea.vmem (!%p4839_p9), [#allocation2], %s4385_s18 }
  0xaf   : > { %4059 = dma.done.wait (%p4840_p13), %s295_s26, 256  }
  0xb0   : > { %4061 = vsyncadd (%p4840_p13), %s295_s26, 4294967040  ;;  %s303_s29 = sand.u32 1, %s4166_s25   ;;  %s307_s2 = scalar_lea.vmem [#allocation5], %s4385_s18 }
  0xb1   : > { %s304_s17 = scalar_lea.sflag [#allocation6], %s303_s29 }
  0xb2   : > { %4063 = dma.done.wait (%p4840_p13), %s304_s17, 256  }
  0xb3   : > { %4065 = vsyncadd (%p4840_p13), %s304_s17, 4294967040  ;;  %p4841_p11 = scmp.eq.s32.totalorder %s4166_s25, 0 }
  0xb5   : > { %4067 = dma.done.wait (%p4841_p11), [#allocation6], 8192   ;;  %p4842_p7 = pmov %p4841_p11 }
  0xb7   : > { %4069 = vsyncadd (%p4842_p7), [#allocation6], 4294959104  ;;  %p4843_p12 = pmov %p4842_p7 }
  0xb8   : > { %p4844_p2 = pmov %p4842_p7 }
  0xb9   : > { %4071 = dma.done.wait (%p4843_p12), [#allocation9], 24576  }
  0xba   : > { %4073 = vsyncadd (%p4844_p2), [#allocation9], 4294942720  ;;  %v4105_v0 = vmov 0.0   ;;  %v358_v1 = vld [vmem:[#allocation7 + $0x8] sm:$0xff]  ;;  %v357_v3 = vld [vmem:[#allocation7] sm:$0xff]  ;;  %vm1019_vm0 = vcmask 523264  }
  0xbb   : > { %485 = vmatprep.mubr.f32.mxu0 %v4105_v0  ;;  %562 = vmatprep.mubr.f32.mxu1 %v4105_v0  ;;  %v362_v2 = vld [vmem:[#allocation7 + $0x28] sm:$0xff]  ;;  %v361_v5 = vld [vmem:[#allocation7 + $0x20] sm:$0xff]  ;;  %s4106_s27 = smov 64   ;;  %vm4446_vm1 = vmpackc.low %vm1019_vm0, %vm1019_vm0  ;;  %vm1107_vm2 = vcmask 130048   ;;  %s352_s12 = scalar_lea.vmem [#allocation11], %s4385_s18 }
  0xbc   : > { %v3318_v4 = vpack.c.bf16 %v362_v2, %v358_v1  ;;  %v366_v6 = vld [vmem:[#allocation7 + $0x48] sm:$0xff]  ;;  %v3320_v8 = vpack.c.bf16 %v361_v5, %v357_v3  ;;  %v365_v10 = vld [vmem:[#allocation7 + $0x40] sm:$0xff]  ;;  %s2866_s10 = sshll.u32 %s352_s12, 4  ;;  %s3065_s14 = sshll.u32 %s4166_s25, 8  ;;  %s4757_s10 = int_to_ptr.vmem [resolvable:$true] %s2866_s10 }
  0xbd   : > { %v370_v7 = vld [vmem:[#allocation7 + $0x68] sm:$0xff]  ;;  %v369_v11 = vld [vmem:[#allocation7 + $0x60] sm:$0xff]  ;;  %s4762_s3 = scalar_lea.hbm %s4812_s6, %s3065_s14  ;;  %s2853_s11 = scalar_lea.sflag [#allocation4], %s4382_s13 }
  0xbe   : > { %v3322_v9 = vpack.c.bf16 %v370_v7, %v366_v6  ;;  %v374_v12 = vld [vmem:[#allocation7 + $0x88] sm:$0xff]  ;;  %3319 = vmatprep.subr.bf16.mxu0 %v3318_v4  ;;  %v3324_v14 = vpack.c.bf16 %v369_v11, %v365_v10  ;;  %v373_v16 = vld [vmem:[#allocation7 + $0x80] sm:$0xff]  ;;  %s4014_s7 = scalar_lea.vmem %s4757_s10, 256  ;;  %s4107_s25 = smov [#allocation11]  }
  0xbf   : > { %v378_v13 = vld [vmem:[#allocation7 + $0xa8] sm:$0xff]  ;;  %3321 = vmatpush1.bf16.msra.mxu0 %v3320_v8  ;;  %v377_v17 = vld [vmem:[#allocation7 + $0xa0] sm:$0xff]  ;;  %p4015_p1 = scmp.ne.s32.totalorder %s4757_s10, %s4014_s7  ;;  %s4018_s20 = sshll.u32 %s4107_s25, 4  ;;  %s4019_s20 = int_to_ptr.vmem [resolvable:$false] %s4018_s20 }
  0xc0   : > { %3323 = vmatprep.subr.bf16.mxu0 %v3322_v9  ;;  %v3326_v15 = vpack.c.bf16 %v378_v13, %v374_v12  ;;  %v382_v18 = vld [vmem:[#allocation7 + $0xc8] sm:$0xff]  ;;  %v3328_v20 = vpack.c.bf16 %v377_v17, %v373_v16  ;;  %v381_v22 = vld [vmem:[#allocation7 + $0xc0] sm:$0xff]  ;;  %s4020_s0 = scalar_lea.vmem %s4019_s20, 512  ;;  %p4021_p8 = scmp.lt.s32.totalorder %s4757_s10, %s4019_s20 }
  0xc1   : > { %v386_v19 = vld [vmem:[#allocation7 + $0xe8] sm:$0xff]  ;;  %v385_v23 = vld [vmem:[#allocation7 + $0xe0] sm:$0xff]  ;;  %p4016_p4 = pnand %p4015_p1, %p4290_p5  ;;  %p4022_p6 = scmp.lt.s32.totalorder %s4020_s0, %s4014_s7 }
  0xc2   : > { %v3330_v21 = vpack.c.bf16 %v386_v19, %v382_v18  ;;  %v390_v24 = vld [vmem:[#allocation7 + $0x108] sm:$0xff]  ;;  %v3332_v26 = vpack.c.bf16 %v385_v23, %v381_v22  ;;  %v389_v28 = vld [vmem:[#allocation7 + $0x100] sm:$0xff] }
  0xc3   : > { %3325 = vmatpush1.bf16.msra.mxu0 %v3324_v14  ;;  %v394_v25 = vld [vmem:[#allocation7 + $0x128] sm:$0xff]  ;;  %v393_v29 = vld [vmem:[#allocation7 + $0x120] sm:$0xff]  ;;  %p4017_p0 = pneg %p4016_p4  ;;  %p4023_p10 = por %p4022_p6, %p4021_p8 }
  0xc4   : > { %3327 = vmatprep.subr.bf16.mxu0 %v3326_v15  ;;  %v3334_v27 = vpack.c.bf16 %v394_v25, %v390_v24  ;;  %v398_v30 = vld [vmem:[#allocation7 + $0x148] sm:$0xff]  ;;  %v3336_v32 = vpack.c.bf16 %v393_v29, %v389_v28  ;;  %v397_v34 = vld [vmem:[#allocation7 + $0x140] sm:$0xff] }
  0xc5   : > { %v402_v31 = vld [vmem:[#allocation7 + $0x168] sm:$0xff]  ;;  %v401_v35 = vld [vmem:[#allocation7 + $0x160] sm:$0xff]  ;;  %p4024_p3 = pnand %p4023_p10, %p4017_p0 }
  0xc6   : > { %v3338_v33 = vpack.c.bf16 %v402_v31, %v398_v30  ;;  %v406_v36 = vld [vmem:[#allocation7 + $0x188] sm:$0xff]  ;;  %v3340_v38 = vpack.c.bf16 %v401_v35, %v397_v34  ;;  %v405_v40 = vld [vmem:[#allocation7 + $0x180] sm:$0xff] }
  0xc7   : > { %3329 = vmatpush1.bf16.msra.mxu0 %v3328_v20  ;;  %v410_v37 = vld [vmem:[#allocation7 + $0x1a8] sm:$0xff]  ;;  %v409_v41 = vld [vmem:[#allocation7 + $0x1a0] sm:$0xff] }
  0xc8   : > { %3331 = vmatprep.subr.bf16.mxu0 %v3330_v21  ;;  %v3342_v39 = vpack.c.bf16 %v410_v37, %v406_v36  ;;  %v414_v42 = vld [vmem:[#allocation7 + $0x1c8] sm:$0xff]  ;;  %v3344_v44 = vpack.c.bf16 %v409_v41, %v405_v40  ;;  %v413_v46 = vld [vmem:[#allocation7 + $0x1c0] sm:$0xff] }
  0xc9   : > { %v418_v43 = vld [vmem:[#allocation7 + $0x1e8] sm:$0xff]  ;;  %v417_v47 = vld [vmem:[#allocation7 + $0x1e0] sm:$0xff] }
  0xca   : > { %v3346_v45 = vpack.c.bf16 %v418_v43, %v414_v42  ;;  %v584_v48 = vld [vmem:[#allocation8 + $0x8] sm:$0xff]  ;;  %v3348_v50 = vpack.c.bf16 %v417_v47, %v413_v46  ;;  %v583_v52 = vld [vmem:[#allocation8] sm:$0xff] }
  0xcb   : > { %3333 = vmatpush1.bf16.msra.mxu0 %v3332_v26  ;;  %v592_v49 = vld [vmem:[#allocation8 + $0x48] sm:$0xff]  ;;  %v591_v53 = vld [vmem:[#allocation8 + $0x40] sm:$0xff] }
  0xcc   : > { %3335 = vmatprep.subr.bf16.mxu0 %v3334_v27  ;;  %v3382_v51 = vpack.c.bf16 %v592_v49, %v584_v48  ;;  %v600_v54 = vld [vmem:[#allocation8 + $0x88] sm:$0xff]  ;;  %v4411_v56 = vld [vmem:[%s298_s19] sm:$0xff]  ;;  %v3384_v57 = vpack.c.bf16 %v591_v53, %v583_v52 }
  0xcd   : > { %v608_v55 = vld [vmem:[#allocation8 + $0xc8] sm:$0xff]  ;;  %v599_v59 = vld [vmem:[#allocation8 + $0x80] sm:$0xff] }
  0xce   : > { %v3386_v58 = vpack.c.bf16 %v608_v55, %v600_v54  ;;  %v607_v60 = vld [vmem:[#allocation8 + $0xc0] sm:$0xff]  ;;  %v616_v61 = vld [vmem:[#allocation8 + $0x108] sm:$0xff] }
  0xcf   : > { %3337 = vmatpush1.bf16.msra.mxu0 %v3336_v32  ;;  %v624_v62 = vld [vmem:[#allocation8 + $0x148] sm:$0xff]  ;;  %v3388_v63 = vpack.c.bf16 %v607_v60, %v599_v59  ;;  %v615_v3 = vld [vmem:[#allocation8 + $0x100] sm:$0xff] }
  0xd0   : > { %3339 = vmatprep.subr.bf16.mxu0 %v3338_v33  ;;  %v4417_v1 = vld [vmem:[%s298_s19 + $0x8] sm:$0xff]  ;;  %v3390_v2 = vpack.c.bf16 %v624_v62, %v616_v61  ;;  %v623_v4 = vld [vmem:[#allocation8 + $0x140] sm:$0xff] }
  0xd1   : > { %v632_v5 = vld [vmem:[#allocation8 + $0x188] sm:$0xff]  ;;  %v3392_v7 = vpack.c.bf16 %v623_v4, %v615_v3  ;;  %v631_v9 = vld [vmem:[#allocation8 + $0x180] sm:$0xff] }
  0xd2   : > { %v640_v6 = vld [vmem:[#allocation8 + $0x1c8] sm:$0xff]  ;;  %v639_v10 = vld [vmem:[#allocation8 + $0x1c0] sm:$0xff] }
  0xd3   : > { %3341 = vmatpush1.bf16.msra.mxu0 %v3340_v38  ;;  %v3394_v8 = vpack.c.bf16 %v640_v6, %v632_v5  ;;  %v648_v11 = vld [vmem:[#allocation8 + $0x208] sm:$0xff]  ;;  %v3396_v13 = vpack.c.bf16 %v639_v10, %v631_v9  ;;  %v647_v15 = vld [vmem:[#allocation8 + $0x200] sm:$0xff] }
  0xd4   : > { %3343 = vmatprep.subr.bf16.mxu0 %v3342_v39  ;;  %v656_v12 = vld [vmem:[#allocation8 + $0x248] sm:$0xff]  ;;  %v655_v16 = vld [vmem:[#allocation8 + $0x240] sm:$0xff] }
  0xd5   : > { %v3398_v14 = vpack.c.bf16 %v656_v12, %v648_v11  ;;  %v664_v17 = vld [vmem:[#allocation8 + $0x288] sm:$0xff]  ;;  %v3400_v19 = vpack.c.bf16 %v655_v16, %v647_v15  ;;  %v663_v21 = vld [vmem:[#allocation8 + $0x280] sm:$0xff] }
  0xd6   : > { %v672_v18 = vld [vmem:[#allocation8 + $0x2c8] sm:$0xff]  ;;  %v671_v22 = vld [vmem:[#allocation8 + $0x2c0] sm:$0xff] }
  0xd7   : > { %3345 = vmatpush1.bf16.msra.mxu0 %v3344_v44  ;;  %v3402_v20 = vpack.c.bf16 %v672_v18, %v664_v17  ;;  %v680_v23 = vld [vmem:[#allocation8 + $0x308] sm:$0xff]  ;;  %v3404_v25 = vpack.c.bf16 %v671_v22, %v663_v21  ;;  %v679_v27 = vld [vmem:[#allocation8 + $0x300] sm:$0xff] }
  0xd8   : > { %3347 = vmatprep.subr.bf16.mxu0 %v3346_v45  ;;  %v688_v24 = vld [vmem:[#allocation8 + $0x348] sm:$0xff]  ;;  %v687_v28 = vld [vmem:[#allocation8 + $0x340] sm:$0xff] }
  0xd9   : > { %v3406_v26 = vpack.c.bf16 %v688_v24, %v680_v23  ;;  %v696_v29 = vld [vmem:[#allocation8 + $0x388] sm:$0xff]  ;;  %v3408_v31 = vpack.c.bf16 %v687_v28, %v679_v27  ;;  %v695_v33 = vld [vmem:[#allocation8 + $0x380] sm:$0xff] }
  0xda   : > { %v704_v30 = vld [vmem:[#allocation8 + $0x3c8] sm:$0xff]  ;;  %v703_v34 = vld [vmem:[#allocation8 + $0x3c0] sm:$0xff] }
  0xdb   : > { %3349 = vmatpush1.bf16.msra.mxu0 %v3348_v50  ;;  %v3410_v32 = vpack.c.bf16 %v704_v30, %v696_v29  ;;  %v588_v35 = vld [vmem:[#allocation8 + $0x28] sm:$0xff]  ;;  %v3412_v37 = vpack.c.bf16 %v703_v34, %v695_v33  ;;  %v587_v39 = vld [vmem:[#allocation8 + $0x20] sm:$0xff] }
  0xdc   : > { %3383 = vmatprep.subr.bf16.mxu0 %v3382_v51  ;;  %v596_v36 = vld [vmem:[#allocation8 + $0x68] sm:$0xff]  ;;  %v595_v40 = vld [vmem:[#allocation8 + $0x60] sm:$0xff] }
  0xdd   : > { %v3446_v38 = vpack.c.bf16 %v596_v36, %v588_v35  ;;  %v604_v41 = vld [vmem:[#allocation8 + $0xa8] sm:$0xff]  ;;  %v4423_v43 = vld [vmem:[%s307_s2] sm:$0xff]  ;;  %v3448_v44 = vpack.c.bf16 %v595_v40, %v587_v39 }
  0xde   : > { %486 = vmatmul.mubr.f32.vlgmr.msra.gmra.mrb[0].mxu0 %v4411_v56  ;;  %v612_v42 = vld [vmem:[#allocation8 + $0xe8] sm:$0xff]  ;;  %v603_v46 = vld [vmem:[#allocation8 + $0xa0] sm:$0xff] }
  0xdf   : > { %3385 = vmatpush1.bf16.msra.mxu0 %v3384_v57  ;;  %491 = vmatprep.mubr.f32.mxu0 %v4105_v0  ;;  %v3450_v45 = vpack.c.bf16 %v612_v42, %v604_v41  ;;  %v611_v47 = vld [vmem:[#allocation8 + $0xe0] sm:$0xff]  ;;  %v620_v48 = vld [vmem:[#allocation8 + $0x128] sm:$0xff] }
  0xe0   : > { %3387 = vmatprep.subr.bf16.mxu0 %v3386_v58  ;;  %v628_v49 = vld [vmem:[#allocation8 + $0x168] sm:$0xff]  ;;  %v3452_v51 = vpack.c.bf16 %v611_v47, %v603_v46  ;;  %v619_v53 = vld [vmem:[#allocation8 + $0x120] sm:$0xff] }
  0xe1   : > { %v4429_v50 = vld [vmem:[%s307_s2 + $0x8] sm:$0xff]  ;;  %v3454_v52 = vpack.c.bf16 %v628_v49, %v620_v48  ;;  %v627_v54 = vld [vmem:[#allocation8 + $0x160] sm:$0xff] }
  0xe2   : > { %492 = vmatmul.mubr.f32.gmra.mrb[2].mxu0 %v4417_v1  ;;  %v636_v55 = vld [vmem:[#allocation8 + $0x1a8] sm:$0xff]  ;;  %v3456_v58 = vpack.c.bf16 %v627_v54, %v619_v53  ;;  %v635_v60 = vld [vmem:[#allocation8 + $0x1a0] sm:$0xff]  ;;  %v360_v49 = vld [vmem:[#allocation7 + $0x18] sm:$0xff] }
  0xe3   : > { %3389 = vmatpush1.bf16.msra.mxu0 %v3388_v63  ;;  %775 = vmatprep.mubr.f32.mxu0 %v4105_v0  ;;  %v644_v57 = vld [vmem:[#allocation8 + $0x1e8] sm:$0xff]  ;;  %v643_v61 = vld [vmem:[#allocation8 + $0x1e0] sm:$0xff]  ;;  %v363_v54 = vld [vmem:[#allocation7 + $0x30] sm:$0xff] }
  0xe4   : > { %3391 = vmatprep.subr.bf16.mxu0 %v3390_v2  ;;  %v3458_v59 = vpack.c.bf16 %v644_v57, %v636_v55  ;;  %v652_v62 = vld [vmem:[#allocation8 + $0x228] sm:$0xff]  ;;  %v3460_v2 = vpack.c.bf16 %v643_v61, %v635_v60  ;;  %v651_v4 = vld [vmem:[#allocation8 + $0x220] sm:$0xff]  ;;  %v368_v55 = vld [vmem:[#allocation7 + $0x58] sm:$0xff] }
  0xe5   : > { %v660_v63 = vld [vmem:[#allocation8 + $0x268] sm:$0xff]  ;;  %v659_v5 = vld [vmem:[#allocation8 + $0x260] sm:$0xff]  ;;  %v372_v57 = vld [vmem:[#allocation7 + $0x78] sm:$0xff] }
  0xe6   : > { %v3462_v3 = vpack.c.bf16 %v660_v63, %v652_v62  ;;  %v668_v6 = vld [vmem:[#allocation8 + $0x2a8] sm:$0xff]  ;;  %v667_v10 = vld [vmem:[#allocation8 + $0x2a0] sm:$0xff]  ;;  %v367_v60 = vld [vmem:[#allocation7 + $0x50] sm:$0xff] }
  0xe7   : > { %3393 = vmatpush1.bf16.msra.mxu0 %v3392_v7  ;;  %v676_v7 = vld [vmem:[#allocation8 + $0x2e8] sm:$0xff]  ;;  %v675_v11 = vld [vmem:[#allocation8 + $0x2e0] sm:$0xff]  ;;  %v371_v61 = vld [vmem:[#allocation7 + $0x70] sm:$0xff] }
  0xe8   : > { %3395 = vmatprep.subr.bf16.mxu0 %v3394_v8  ;;  %v3464_v8 = vpack.c.bf16 %v659_v5, %v651_v4  ;;  %v3466_v9 = vpack.c.bf16 %v676_v7, %v668_v6  ;;  %v684_v12 = vld [vmem:[#allocation8 + $0x328] sm:$0xff]  ;;  %v683_v16 = vld [vmem:[#allocation8 + $0x320] sm:$0xff]  ;;  %v376_v62 = vld [vmem:[#allocation7 + $0x98] sm:$0xff] }
  0xe9   : > { %v691_v17 = vld [vmem:[#allocation8 + $0x360] sm:$0xff]  ;;  %v700_v18 = vld [vmem:[#allocation8 + $0x3a8] sm:$0xff]  ;;  %v380_v63 = vld [vmem:[#allocation7 + $0xb8] sm:$0xff] }
  0xea   : > { %v699_v22 = vld [vmem:[#allocation8 + $0x3a0] sm:$0xff]  ;;  %v375_v4 = vld [vmem:[#allocation7 + $0x90] sm:$0xff]  ;;  %v384_v6 = vld [vmem:[#allocation7 + $0xd8] sm:$0xff] }
  0xeb   : > { %3397 = vmatpush1.bf16.msra.mxu0 %v3396_v13  ;;  %v692_v13 = vld [vmem:[#allocation8 + $0x368] sm:$0xff]  ;;  %v707_v23 = vld [vmem:[#allocation8 + $0x3e0] sm:$0xff]  ;;  %v379_v5 = vld [vmem:[#allocation7 + $0xb0] sm:$0xff] }
  0xec   : > { %3399 = vmatprep.subr.bf16.mxu0 %v3398_v14  ;;  %v3468_v14 = vpack.c.bf16 %v675_v11, %v667_v10  ;;  %v3470_v15 = vpack.c.bf16 %v692_v13, %v684_v12  ;;  %v3476_v24 = vpack.c.bf16 %v707_v23, %v699_v22  ;;  %v388_v7 = vld [vmem:[#allocation7 + $0xf8] sm:$0xff]  ;;  %v383_v10 = vld [vmem:[#allocation7 + $0xd0] sm:$0xff] }
  0xed   : > { %v387_v11 = vld [vmem:[#allocation7 + $0xf0] sm:$0xff]  ;;  %v392_v12 = vld [vmem:[#allocation7 + $0x118] sm:$0xff] }
  0xee   : > { %v396_v13 = vld [vmem:[#allocation7 + $0x138] sm:$0xff]  ;;  %v399_v22 = vld [vmem:[#allocation7 + $0x150] sm:$0xff] }
  0xef   : > { %3401 = vmatpush1.bf16.msra.mxu0 %v3400_v19  ;;  %v708_v19 = vld [vmem:[#allocation8 + $0x3e8] sm:$0xff]  ;;  %v403_v23 = vld [vmem:[#allocation7 + $0x170] sm:$0xff] }
  0xf0   : > { %3403 = vmatprep.subr.bf16.mxu0 %v3402_v20  ;;  %v3472_v20 = vpack.c.bf16 %v691_v17, %v683_v16  ;;  %v3474_v21 = vpack.c.bf16 %v708_v19, %v700_v18  ;;  %v391_v16 = vld [vmem:[#allocation7 + $0x110] sm:$0xff]  ;;  %v400_v18 = vld [vmem:[#allocation7 + $0x158] sm:$0xff] }
  0xf1   : > { %v395_v17 = vld [vmem:[#allocation7 + $0x130] sm:$0xff]  ;;  %v404_v19 = vld [vmem:[#allocation7 + $0x178] sm:$0xff] }
  0xf3   : > { %3405 = vmatpush1.bf16.msra.mxu0 %v3404_v25 }
  0xf4   : > { %3407 = vmatprep.subr.bf16.mxu0 %v3406_v26 }
  0xf7   : > { %3409 = vmatpush1.bf16.msra.mxu0 %v3408_v31 }
  0xf8   : > { %3411 = vmatprep.subr.bf16.mxu0 %v3410_v32 }
  0xfb   : > { %3413 = vmatpush1.bf16.msra.mxu0 %v3412_v37 }
  0xfc   : > { %3447 = vmatprep.subr.bf16.mxu0 %v3446_v38 }
  0xfe   : > { %776 = vmatmul.mubr.f32.vlgmr.msra.gmra.mrb[4].mxu0 %v4423_v43 }
  0xff   : > { %781 = vmatprep.mubr.f32.mxu0 %v4105_v0  ;;  %3449 = vmatpush1.bf16.msra.mxu0 %v3448_v44 }
 0x100   : > { %3451 = vmatprep.subr.bf16.mxu0 %v3450_v45 }
 0x102   : > { %782 = vmatmul.mubr.f32.gmra.mrb[6].mxu0 %v4429_v50 }
 0x103   : > { %3453 = vmatpush1.bf16.msra.mxu0 %v3452_v51  ;;  %929 = vmatprep.mubr.f32.mxu0 %v4105_v0  ;;  %v364_v51 = vld [vmem:[#allocation7 + $0x38] sm:$0xff] }
 0x104   : > { %3455 = vmatprep.subr.bf16.mxu0 %v3454_v52  ;;  %v359_v52 = vld [vmem:[#allocation7 + $0x10] sm:$0xff]  ;;  %v3350_v53 = vpack.c.bf16 %v364_v51, %v360_v49  ;;  %v416_v49 = vld [vmem:[#allocation7 + $0x1d8] sm:$0xff] }
 0x105   : > { %v420_v51 = vld [vmem:[#allocation7 + $0x1f8] sm:$0xff] }
 0x106   : > { %3351 = vmatprep.subr.bf16.mxu1 %v3350_v53 }
 0x107   : > { %3457 = vmatpush1.bf16.msra.mxu0 %v3456_v58  ;;  %v3352_v58 = vpack.c.bf16 %v363_v54, %v359_v52 }
 0x108   : > { %3459 = vmatprep.subr.bf16.mxu0 %v3458_v59  ;;  %v3354_v59 = vpack.c.bf16 %v372_v57, %v368_v55  ;;  %v3378_v55 = vpack.c.bf16 %v420_v51, %v416_v49  ;;  %v415_v57 = vld [vmem:[#allocation7 + $0x1d0] sm:$0xff] }
 0x109   : > { %3353 = vmatpush1.bf16.msra.mxu1 %v3352_v58  ;;  %v419_v58 = vld [vmem:[#allocation7 + $0x1f0] sm:$0xff] }
 0x10a   : > { %3355 = vmatprep.subr.bf16.mxu1 %v3354_v59  ;;  %v586_v59 = vld [vmem:[#allocation8 + $0x18] sm:$0xff] }
 0x10b   : > { %3461 = vmatpush1.bf16.msra.mxu0 %v3460_v2  ;;  %v3356_v2 = vpack.c.bf16 %v371_v61, %v367_v60  ;;  %v594_v60 = vld [vmem:[#allocation8 + $0x58] sm:$0xff]  ;;  %v3380_v61 = vpack.c.bf16 %v419_v58, %v415_v57 }
 0x10c   : > { %3463 = vmatprep.subr.bf16.mxu0 %v3462_v3  ;;  %v3358_v3 = vpack.c.bf16 %v380_v63, %v376_v62  ;;  %v3414_v62 = vpack.c.bf16 %v594_v60, %v586_v59  ;;  %v585_v63 = vld [vmem:[#allocation8 + $0x10] sm:$0xff] }
 0x10d   : > { %3357 = vmatpush1.bf16.msra.mxu1 %v3356_v2  ;;  %v593_v2 = vld [vmem:[#allocation8 + $0x50] sm:$0xff] }
 0x10e   : > { %3359 = vmatprep.subr.bf16.mxu1 %v3358_v3  ;;  %v602_v3 = vld [vmem:[#allocation8 + $0x98] sm:$0xff]  ;;  %v697_v59 = vld [vmem:[#allocation8 + $0x390] sm:$0xff] }
 0x10f   : > { %3465 = vmatpush1.bf16.msra.mxu0 %v3464_v8  ;;  %v3360_v8 = vpack.c.bf16 %v379_v5, %v375_v4  ;;  %v610_v4 = vld [vmem:[#allocation8 + $0xd8] sm:$0xff]  ;;  %v705_v60 = vld [vmem:[#allocation8 + $0x3d0] sm:$0xff] }
 0x110   : > { %3467 = vmatprep.subr.bf16.mxu0 %v3466_v9  ;;  %v3362_v9 = vpack.c.bf16 %v388_v7, %v384_v6  ;;  %v3416_v6 = vpack.c.bf16 %v593_v2, %v585_v63  ;;  %v3418_v7 = vpack.c.bf16 %v610_v4, %v602_v3  ;;  %v3444_v63 = vpack.c.bf16 %v705_v60, %v697_v59  ;;  %v589_v3 = vld [vmem:[#allocation8 + $0x30] sm:$0xff] }
 0x111   : > { %3361 = vmatpush1.bf16.msra.mxu1 %v3360_v8  ;;  %v601_v8 = vld [vmem:[#allocation8 + $0x90] sm:$0xff] }
 0x112   : > { %3363 = vmatprep.subr.bf16.mxu1 %v3362_v9  ;;  %v609_v9 = vld [vmem:[#allocation8 + $0xd0] sm:$0xff] }
 0x113   : > { %3469 = vmatpush1.bf16.msra.mxu0 %v3468_v14  ;;  %v3364_v14 = vpack.c.bf16 %v387_v11, %v383_v10  ;;  %v618_v10 = vld [vmem:[#allocation8 + $0x118] sm:$0xff]  ;;  %v597_v4 = vld [vmem:[#allocation8 + $0x70] sm:$0xff] }
 0x114   : > { %3471 = vmatprep.subr.bf16.mxu0 %v3470_v15  ;;  %v3366_v15 = vpack.c.bf16 %v396_v13, %v392_v12  ;;  %v626_v11 = vld [vmem:[#allocation8 + $0x158] sm:$0xff]  ;;  %v3420_v12 = vpack.c.bf16 %v609_v9, %v601_v8  ;;  %v605_v9 = vld [vmem:[#allocation8 + $0xb0] sm:$0xff] }
 0x115   : > { %3365 = vmatpush1.bf16.msra.mxu1 %v3364_v14  ;;  %v3422_v13 = vpack.c.bf16 %v626_v11, %v618_v10  ;;  %v617_v14 = vld [vmem:[#allocation8 + $0x110] sm:$0xff]  ;;  %v622_v11 = vld [vmem:[#allocation8 + $0x138] sm:$0xff] }
 0x116   : > { %3367 = vmatprep.subr.bf16.mxu1 %v3366_v15  ;;  %v625_v15 = vld [vmem:[#allocation8 + $0x150] sm:$0xff] }
 0x117   : > { %3473 = vmatpush1.bf16.msra.mxu0 %v3472_v20  ;;  %v3368_v20 = vpack.c.bf16 %v395_v17, %v391_v16  ;;  %v634_v16 = vld [vmem:[#allocation8 + $0x198] sm:$0xff]  ;;  %v613_v10 = vld [vmem:[#allocation8 + $0xf0] sm:$0xff] }
 0x118   : > { %3475 = vmatprep.subr.bf16.mxu0 %v3474_v21  ;;  %v3370_v21 = vpack.c.bf16 %v404_v19, %v400_v18  ;;  %v642_v17 = vld [vmem:[#allocation8 + $0x1d8] sm:$0xff]  ;;  %v3424_v18 = vpack.c.bf16 %v625_v15, %v617_v14  ;;  %v633_v19 = vld [vmem:[#allocation8 + $0x190] sm:$0xff] }
 0x119   : > { %3369 = vmatpush1.bf16.msra.mxu1 %v3368_v20  ;;  %v650_v20 = vld [vmem:[#allocation8 + $0x218] sm:$0xff]  ;;  %v621_v15 = vld [vmem:[#allocation8 + $0x130] sm:$0xff] }
 0x11a   : > { %3371 = vmatprep.subr.bf16.mxu1 %v3370_v21  ;;  %v658_v21 = vld [vmem:[#allocation8 + $0x258] sm:$0xff]  ;;  %v701_v60 = vld [vmem:[#allocation8 + $0x3b0] sm:$0xff] }
 0x11b   : > { %3477 = vmatpush1.bf16.msra.mxu0 %v3476_v24  ;;  %v408_v24 = vld [vmem:[#allocation7 + $0x198] sm:$0xff] }
 0x11e   : > { %930 = vmatmul.mubr.f32.vlgmr.msra.gmra.mrb[8].mxu0 %v4423_v43 }
 0x11f   : > { %935 = vmatprep.mubr.f32.mxu0 %v4105_v0 }
 0x122   : > { %936 = vmatmul.mubr.f32.gmra.mrb[10].mxu0 %v4429_v50 }
 0x1b1   : > { %v487_v25 = vpop.f32.mrb[0].mxu0 }
 0x1b2   : > { %v575_v26 = vmul.f32 0.088388346, %v487_v25  ;;  %v4436_v27 = vpop.f32.mrb[1].mxu0  ;;  %v412_v25 = vld [vmem:[#allocation7 + $0x1b8] sm:$0xff] }
 0x1b4   : > { %3210 = vmatprep.mubr.msk.f32.mxu0 %vm1019_vm0, %v575_v26 }
 0x1b5   : > { %v493_v28 = vpop.f32.mrb[2].mxu0 }
 0x1b6   : > { %v579_v29 = vmul.f32 0.088388346, %v493_v28  ;;  %v4439_v30 = vpop.f32.mrb[3].mxu0  ;;  %v3372_v28 = vpack.c.bf16 %v403_v23, %v399_v22  ;;  %v3430_v23 = vpack.c.bf16 %v658_v21, %v650_v20  ;;  %v645_v20 = vld [vmem:[#allocation8 + $0x1f0] sm:$0xff]  ;;  %v654_v21 = vld [vmem:[#allocation8 + $0x238] sm:$0xff] }
 0x1b8   : > { %1213 = vrot.lane.b32.xlu1 %v579_v29, %s4106_s27  ;;  %3373 = vmatpush1.bf16.msra.mxu1 %v3372_v28  ;;  %v674_v28 = vld [vmem:[#allocation8 + $0x2d8] sm:$0xff] }
 0x1d1   : > { %v777_v31 = vpop.f32.mrb[4].mxu0 }
 0x1d2   : > { %v4442_v32 = vpop.f32.mrb[5].mxu0 }
 0x1d5   : > { %v783_v33 = vpop.f32.mrb[6].mxu0 }
 0x1d6   : > { %v3510_v35 = vpack.c.bf16 %v783_v33, %v777_v31  ;;  %v4450_v36 = vpop.f32.mrb[7].mxu0  ;;  %v3746_v37 = vpack.i.bf16 %v783_v33, %v777_v31  ;;  %v407_v33 = vld [vmem:[#allocation7 + $0x190] sm:$0xff] }
 0x1d7   : > { %v3756_v38 = vpack.i.bf16 %v4450_v36, %v4442_v32  ;;  %v4456_v39 = vpack.c.bf16 %v4450_v36, %v4442_v32 }
 0x1d8   : > { %3747 = vrot.lane.b32.xlu0 %v3746_v37, %s4106_s27  ;;  %3512 = vmatprep.subr.msk.bf16.mxu0 %vm4446_vm1, %v3510_v35  ;;  %v3374_v37 = vpack.c.bf16 %v412_v25, %v408_v24  ;;  %v649_v24 = vld [vmem:[#allocation8 + $0x210] sm:$0xff] }
 0x1d9   : > { %3515 = vmatpush3.bf16.xpose.msk.msra.mxu0 %vm4446_vm1, %v3510_v35  ;;  %v411_v35 = vld [vmem:[#allocation7 + $0x1b0] sm:$0xff] }
 0x1da   : > { %v3376_v54 = vpack.c.bf16 %v411_v35, %v407_v33  ;;  %3375 = vmatprep.subr.bf16.mxu1 %v3374_v37  ;;  %v657_v25 = vld [vmem:[#allocation8 + $0x250] sm:$0xff]  ;;  %v682_v35 = vld [vmem:[#allocation8 + $0x318] sm:$0xff] }
 0x1db   : > { %v673_v33 = vld [vmem:[#allocation8 + $0x2d0] sm:$0xff]  ;;  %v690_v37 = vld [vmem:[#allocation8 + $0x358] sm:$0xff] }
 0x1dc   : > { %1211 = vrot.lane.b32.xlu0 %v575_v26, %s4106_s27  ;;  %3377 = vmatpush1.bf16.msra.mxu1 %v3376_v54  ;;  %v3438_v51 = vpack.c.bf16 %v690_v37, %v682_v35  ;;  %v698_v54 = vld [vmem:[#allocation8 + $0x398] sm:$0xff]  ;;  %v677_v35 = vld [vmem:[#allocation8 + $0x2f0] sm:$0xff] }
 0x1dd   : > { %3379 = vmatprep.subr.bf16.mxu1 %v3378_v55  ;;  %v706_v55 = vld [vmem:[#allocation8 + $0x3d8] sm:$0xff] }
 0x1de   : > { %v3442_v58 = vpack.c.bf16 %v706_v55, %v698_v54  ;;  %v686_v37 = vld [vmem:[#allocation8 + $0x338] sm:$0xff]  ;;  %v693_v54 = vld [vmem:[#allocation8 + $0x370] sm:$0xff] }
 0x1df   : > { %v702_v55 = vld [vmem:[#allocation8 + $0x3b8] sm:$0xff] }
 0x1e0   : > { %3211 = vmatmul.mubr.msk.f32.vlgmr.msra.gmra.mrb[12].mxu0 %vm1019_vm0, %v579_v29  ;;  %3381 = vmatpush1.bf16.msra.mxu1 %v3380_v61  ;;  %v590_v61 = vld [vmem:[#allocation8 + $0x38] sm:$0xff] }
 0x1e1   : > { %3415 = vmatprep.subr.bf16.mxu1 %v3414_v62  ;;  %v598_v62 = vld [vmem:[#allocation8 + $0x78] sm:$0xff] }
 0x1e2   : > { %v3478_v2 = vpack.c.bf16 %v598_v62, %v590_v61  ;;  %v709_v61 = vld [vmem:[#allocation8 + $0x3f0] sm:$0xff] }
 0x1e3   : > { %563 = vmatmul.mubr.f32.vlgmr.msra.gmra.mrb[0].mxu1 %v4411_v56  ;;  %v641_v56 = vld [vmem:[#allocation8 + $0x1d0] sm:$0xff]  ;;  %v3508_v62 = vpack.c.bf16 %v709_v61, %v701_v60 }
 0x1e4   : > { %3417 = vmatpush1.bf16.msra.mxu1 %v3416_v6  ;;  %568 = vmatprep.mubr.f32.mxu1 %v4105_v0  ;;  %v3428_v22 = vpack.c.bf16 %v641_v56, %v633_v19  ;;  %v614_v6 = vld [vmem:[#allocation8 + $0xf8] sm:$0xff]  ;;  %v637_v56 = vld [vmem:[#allocation8 + $0x1b0] sm:$0xff] }
 0x1e5   : > { %3419 = vmatprep.subr.bf16.mxu1 %v3418_v7  ;;  %v3480_v7 = vpack.c.bf16 %v597_v4, %v589_v3 }
 0x1e7   : > { %569 = vmatmul.mubr.f32.gmra.mrb[2].mxu1 %v4417_v1  ;;  %v3432_v1 = vpack.c.bf16 %v657_v25, %v649_v24  ;;  %v653_v25 = vld [vmem:[#allocation8 + $0x230] sm:$0xff] }
 0x1e8   : > { %3421 = vmatpush1.bf16.msra.mxu1 %v3420_v12  ;;  %852 = vmatprep.mubr.f32.mxu1 %v4105_v0  ;;  %v630_v12 = vld [vmem:[#allocation8 + $0x178] sm:$0xff] }
 0x1e9   : > { %3423 = vmatprep.subr.bf16.mxu1 %v3422_v13  ;;  %v3484_v13 = vpack.c.bf16 %v613_v10, %v605_v9  ;;  %v3486_v14 = vpack.c.bf16 %v630_v12, %v622_v11 }
 0x1ec   : > { %3425 = vmatpush1.bf16.msra.mxu1 %v3424_v18  ;;  %v646_v18 = vld [vmem:[#allocation8 + $0x1f8] sm:$0xff] }
 0x1f1   : > { %v4465_v40 = vpop.f32.mrb[8].mxu0 }
 0x1f2   : > { %v4467_v41 = vpop.f32.mrb[9].mxu0 }
 0x1f5   : > { %v4469_v42 = vpop.f32.mrb[10].mxu0 }
 0x1f6   : > { %v3751_v44 = vpack.i.bf16 %v4469_v42, %v4465_v40  ;;  %v4475_v45 = vpack.c.bf16 %v4469_v42, %v4465_v40  ;;  %v4477_v46 = vpop.f32.mrb[11].mxu0 }
 0x1f7   : > { %v3761_v47 = vpack.i.bf16 %v4477_v46, %v4467_v41  ;;  %v4483_v48 = vpack.c.bf16 %v4477_v46, %v4467_v41 }
 0x22a   : > { %v1214_v5 = vpop.permute.xlu1 %1213 }
 0x24a   : > { %v3748_v26 = vpop.permute.xlu0 %3747 }
 0x24b   : > { %v3750_v29 = vunpack.i.h.bf16 %v3748_v26  ;;  %v3749_v31 = vunpack.i.l.bf16 %v3748_v26  ;;  %v666_v26 = vld [vmem:[#allocation8 + $0x298] sm:$0xff] }
 0x24d   : > { %v3520_v52 = vpack.c.bf16 %v3750_v29, %v3749_v31  ;;  %v3434_v29 = vpack.c.bf16 %v674_v28, %v666_v26  ;;  %v665_v31 = vld [vmem:[#allocation8 + $0x290] sm:$0xff]  ;;  %v670_v28 = vld [vmem:[#allocation8 + $0x2b8] sm:$0xff] }
 0x24e   : > { %v1212_v53 = vpop.permute.xlu0 %1211  ;;  %v3436_v49 = vpack.c.bf16 %v673_v33, %v665_v31  ;;  %v661_v26 = vld [vmem:[#allocation8 + $0x270] sm:$0xff] }
 0x24f   : > { %3522 = vmatprep.subr.msk.bf16.mxu0 %vm4446_vm1, %v3520_v52  ;;  %3224 = vmatprep.mubr.msk.f32.mxu0 %vm1019_vm0, %v1212_v53  ;;  %v689_v53 = vld [vmem:[#allocation8 + $0x350] sm:$0xff] }
 0x250   : > { %3525 = vmatpush3.bf16.xpose.msk.msra.mxu0 %vm4446_vm1, %v3520_v52  ;;  %v681_v52 = vld [vmem:[#allocation8 + $0x310] sm:$0xff] }
 0x251   : > { %3537 = vmatprep.subr.bf16.mxu0 %v4483_v48  ;;  %v3440_v57 = vpack.c.bf16 %v689_v53, %v681_v52  ;;  %v669_v33 = vld [vmem:[#allocation8 + $0x2b0] sm:$0xff] }
 0x252   : > { %v685_v53 = vld [vmem:[#allocation8 + $0x330] sm:$0xff] }
 0x257   : > { %3225 = vmatmul.mubr.msk.f32.vlgmr.msra.gmra.mrb[14].mxu0 %vm1019_vm0, %v1214_v5  ;;  %v606_v5 = vld [vmem:[#allocation8 + $0xb8] sm:$0xff] }
 0x258   : > { %3539 = vmatpush3.bf16.msra.mxu0 %v4483_v48  ;;  %v3426_v48 = vpack.c.bf16 %v642_v17, %v634_v16  ;;  %v3482_v8 = vpack.c.bf16 %v614_v6, %v606_v5  ;;  %v629_v16 = vld [vmem:[#allocation8 + $0x170] sm:$0xff]  ;;  %v638_v17 = vld [vmem:[#allocation8 + $0x1b8] sm:$0xff] }
 0x259   : > { %v3490_v19 = vpack.c.bf16 %v646_v18, %v638_v17 }
 0x25a   : > { %3427 = vmatprep.subr.bf16.mxu1 %v3426_v48  ;;  %v3488_v48 = vpack.c.bf16 %v629_v16, %v621_v15 }
 0x25b   : > { %3429 = vmatpush1.bf16.msra.mxu1 %v3428_v22  ;;  %v662_v22 = vld [vmem:[#allocation8 + $0x278] sm:$0xff] }
 0x25c   : > { %3431 = vmatprep.subr.bf16.mxu1 %v3430_v23  ;;  %v3492_v23 = vpack.c.bf16 %v645_v20, %v637_v56  ;;  %v3494_v24 = vpack.c.bf16 %v662_v22, %v654_v21 }
 0x25f   : > { %3433 = vmatpush1.bf16.msra.mxu1 %v3432_v1  ;;  %v678_v1 = vld [vmem:[#allocation8 + $0x2f8] sm:$0xff] }
 0x260   : > { %3435 = vmatprep.subr.bf16.mxu1 %v3434_v29  ;;  %v3496_v29 = vpack.c.bf16 %v661_v26, %v653_v25  ;;  %v3498_v31 = vpack.c.bf16 %v678_v1, %v670_v28  ;;  %v576_v25 = vmul.f32 0.088388346, %v4436_v27  ;;  %v580_v26 = vmul.f32 0.088388346, %v4439_v30 }
 0x263   : > { %3437 = vmatpush1.bf16.msra.mxu1 %v3436_v49  ;;  %v694_v49 = vld [vmem:[#allocation8 + $0x378] sm:$0xff] }
 0x264   : > { %3439 = vmatprep.subr.bf16.mxu1 %v3438_v51  ;;  %v3500_v51 = vpack.c.bf16 %v677_v35, %v669_v33  ;;  %v3502_v52 = vpack.c.bf16 %v694_v49, %v686_v37 }
 0x267   : > { %3441 = vmatpush1.bf16.msra.mxu1 %v3440_v57  ;;  %v710_v57 = vld [vmem:[#allocation8 + $0x3f8] sm:$0xff] }
 0x268   : > { %3443 = vmatprep.subr.bf16.mxu1 %v3442_v58  ;;  %v3504_v58 = vpack.c.bf16 %v693_v54, %v685_v53  ;;  %v3506_v59 = vpack.c.bf16 %v710_v57, %v702_v55 }
 0x26b   : > { %3445 = vmatpush1.bf16.msra.mxu1 %v3444_v63 }
 0x26c   : > { %3479 = vmatprep.subr.bf16.mxu1 %v3478_v2 }
 0x26e   : > { %853 = vmatmul.mubr.f32.vlgmr.msra.gmra.mrb[4].mxu1 %v4423_v43 }
 0x26f   : > { %3481 = vmatpush1.bf16.msra.mxu1 %v3480_v7  ;;  %858 = vmatprep.mubr.f32.mxu1 %v4105_v0 }
 0x270   : > { %3483 = vmatprep.subr.bf16.mxu1 %v3482_v8 }
 0x272   : > { %859 = vmatmul.mubr.f32.gmra.mrb[6].mxu1 %v4429_v50 }
 0x273   : > { %3485 = vmatpush1.bf16.msra.mxu1 %v3484_v13  ;;  %1006 = vmatprep.mubr.f32.mxu1 %v4105_v0 }
 0x274   : > { %3487 = vmatprep.subr.bf16.mxu1 %v3486_v14 }
 0x277   : > { %3489 = vmatpush1.bf16.msra.mxu1 %v3488_v48 }
 0x278   : > { %3491 = vmatprep.subr.bf16.mxu1 %v3490_v19 }
 0x27b   : > { %3493 = vmatpush1.bf16.msra.mxu1 %v3492_v23 }
 0x27c   : > { %3495 = vmatprep.subr.bf16.mxu1 %v3494_v24 }
 0x27f   : > { %3497 = vmatpush1.bf16.msra.mxu1 %v3496_v29 }
 0x280   : > { %3499 = vmatprep.subr.bf16.mxu1 %v3498_v31 }
 0x283   : > { %3501 = vmatpush1.bf16.msra.mxu1 %v3500_v51 }
 0x284   : > { %3503 = vmatprep.subr.bf16.mxu1 %v3502_v52 }
 0x287   : > { %3505 = vmatpush1.bf16.msra.mxu1 %v3504_v58 }
 0x288   : > { %3507 = vmatprep.subr.bf16.mxu1 %v3506_v59 }
 0x28b   : > { %3509 = vmatpush1.bf16.msra.mxu1 %v3508_v62 }
 0x28c   : > { %3517 = vmatprep.subr.bf16.mxu1 %v4475_v45 }
 0x28e   : > { %1007 = vmatmul.mubr.f32.vlgmr.msra.gmra.mrb[8].mxu1 %v4423_v43 }
 0x28f   : > { %3519 = vmatpush3.bf16.msra.mxu1 %v4475_v45  ;;  %1012 = vmatprep.mubr.f32.mxu1 %v4105_v0 }
 0x292   : > { %1013 = vmatmul.mubr.f32.gmra.mrb[10].mxu1 %v4429_v50 }
 0x2b3   : > { %v3212_v63 = vpop.f32.mrb[12].mxu0 }
 0x2b4   : > { %v1098_v2 = vpop.f32.mrb[13].mxu0  ;;  %v1111_v3 = vsel %vm1107_vm2, %v3212_v63, -inf }
 0x2b5   : > { %1112 = vmax.xlane.f32.xlu0 %v1111_v3  ;;  %v1108_v4 = vsel %vm1107_vm2, %v1098_v2, -inf }
 0x2b6   : > { %1109 = vmax.xlane.f32.xlu1 %v1108_v4  ;;  %v4524_v40 = vpop.f32.mrb[0].mxu1 }
 0x2b7   : > { %v4526_v42 = vpop.f32.mrb[1].mxu1 }
 0x32a   : > { %v3226_v5 = vpop.f32.mrb[14].mxu0 }
 0x32b   : > { %v1293_v6 = vpop.f32.mrb[15].mxu0  ;;  %v1305_v7 = vsel %vm1107_vm2, %v3226_v5, -inf }
 0x32c   : > { %1306 = vmax.xlane.f32.xlu1 %v1305_v7  ;;  %v1302_v43 = vsel %vm1107_vm2, %v1293_v6, -inf }
 0x32d   : > { %1303 = vmax.xlane.f32.xlu0 %v1302_v43 }
 0x342   : > { %v1113_v0 = vpop.xlane.xlu0 %1112 }
 0x343   : > { %v1115_v45 = vsub.f32 %v3212_v63, %v1113_v0  ;;  %v1110_v50 = vpop.xlane.xlu1 %1109 }
 0x344   : > { %v1114_v8 = vsub.f32 %v1098_v2, %v1110_v50 }
 0x345   : > { %v1118_v9 = vmul.f32 1.442695, %v1115_v45 }
 0x346   : > { %v1116_v10 = vmul.f32 1.442695, %v1114_v8 }
 0x347   : > { %3806 = vpow2.f32 %v1118_v9 }
 0x348   : > { %3808 = vpow2.f32 %v1116_v10 }
 0x351   : > { %v3807_v11 = vpop.eup %3806 }
 0x352   : > { %v3809_v12 = vpop.eup %3808  ;;  %v1123_v13 = vsel %vm1107_vm2, %v3807_v11, 0.0 }
 0x353   : > { %1124 = vadd.xlane.f32.xlu1 %v1123_v13  ;;  %v1120_v14 = vsel %vm1107_vm2, %v3809_v12, 0.0 }
 0x354   : > { %1121 = vadd.xlane.f32.xlu0 %v1120_v14 }
 0x3b9   : > { %v1307_v15 = vpop.xlane.xlu1 %1306 }
 0x3ba   : > { %v1309_v16 = vsub.f32 %v3226_v5, %v1307_v15  ;;  %v1304_v17 = vpop.xlane.xlu0 %1303 }
 0x3bb   : > { %v1308_v18 = vsub.f32 %v1293_v6, %v1304_v17 }
 0x3bc   : > { %v1312_v48 = vmul.f32 1.442695, %v1309_v16 }
 0x3bd   : > { %v1310_v19 = vmul.f32 1.442695, %v1308_v18 }
 0x3be   : > { %3810 = vpow2.f32 %v1312_v48 }
 0x3bf   : > { %3812 = vpow2.f32 %v1310_v19 }
 0x3c8   : > { %v3811_v56 = vpop.eup %3810 }
 0x3c9   : > { %v3813_v20 = vpop.eup %3812  ;;  %v1317_v21 = vsel %vm1107_vm2, %v3811_v56, 0.0 }
 0x3ca   : > { %1318 = vadd.xlane.f32.xlu1 %v1317_v21  ;;  %v1314_v22 = vsel %vm1107_vm2, %v3813_v20, 0.0 }
 0x3cb   : > { %1315 = vadd.xlane.f32.xlu0 %v1314_v22 }
 0x3e0   : > { %v1125_v23 = vpop.xlane.xlu1 %1124 }
 0x3e1   : > { %3814 = vrcp.f32 %v1125_v23  ;;  %3752 = vrot.lane.b32.xlu0 %v3751_v44, %s4106_s27  ;;  %v1122_v24 = vpop.xlane.xlu0 %1121  ;;  %v4528_v44 = vpop.f32.mrb[2].mxu1 }
 0x3e2   : > { %3816 = vrcp.f32 %v1122_v24  ;;  %v4530_v27 = vpop.f32.mrb[3].mxu1 }
 0x3e3   : > { %v4532_v33 = vpop.f32.mrb[4].mxu1 }
 0x3e4   : > { %v4534_v30 = vpop.f32.mrb[5].mxu1 }
 0x3e5   : > { %1603 = vrot.lane.b32.xlu0 %v576_v25, %s4106_s27  ;;  %v4536_v35 = vpop.f32.mrb[6].mxu1 }
 0x3e6   : > { %v3766_v37 = vpack.i.bf16 %v4536_v35, %v4532_v33  ;;  %v4542_v49 = vpack.c.bf16 %v4536_v35, %v4532_v33  ;;  %v4544_v51 = vpop.f32.mrb[7].mxu1 }
 0x3e7   : > { %v3776_v52 = vpack.i.bf16 %v4544_v51, %v4534_v30  ;;  %v4550_v53 = vpack.c.bf16 %v4544_v51, %v4534_v30  ;;  %v4552_v54 = vpop.f32.mrb[8].mxu1 }
 0x3e8   : > { %v4554_v55 = vpop.f32.mrb[9].mxu1 }
 0x3e9   : > { %1605 = vrot.lane.b32.xlu0 %v580_v26, %s4106_s27  ;;  %v4556_v57 = vpop.f32.mrb[10].mxu1 }
 0x3ea   : > { %v3771_v58 = vpack.i.bf16 %v4556_v57, %v4552_v54  ;;  %v4562_v59 = vpack.c.bf16 %v4556_v57, %v4552_v54  ;;  %v4564_v60 = vpop.f32.mrb[11].mxu1 }
 0x3eb   : > { %v3815_v28 = vpop.eup %3814  ;;  %v3781_v61 = vpack.i.bf16 %v4564_v60, %v4554_v55  ;;  %v4570_v62 = vpack.c.bf16 %v4564_v60, %v4554_v55  ;;  %v2629_v55 = vld [vmem:[#allocation10] sm:$0xff]  ;;  %v2630_v60 = vld [vmem:[#allocation10 + $0x8] sm:$0xff] }
 0x3ec   : > { %v3817_v1 = vpop.eup %3816  ;;  %v1129_v31 = vmul.f32 %v3815_v28, %v3807_v11 }
 0x3ed   : > { %v1128_v29 = vmul.f32 %v3817_v1, %v3809_v12 }
 0x3ef   : > { %3217 = vmatprep.mubr.msk.f32.mxu1 %vm1107_vm2, %v1128_v29 }
 0x3f0   : > { %3218 = vmatmul.mubr.msk.f32.vlgmr.msra.gmra.mrb[12].mxu1 %vm1107_vm2, %v1129_v31 }
 0x457   : > { %v1319_v63 = vpop.xlane.xlu1 %1318 }
 0x458   : > { %3818 = vrcp.f32 %v1319_v63  ;;  %v1316_v2 = vpop.xlane.xlu0 %1315 }
 0x459   : > { %3820 = vrcp.f32 %v1316_v2 }
 0x45c   : > { %v3753_v3 = vpop.permute.xlu0 %3752 }
 0x45d   : > { %v3755_v4 = vunpack.i.h.bf16 %v3753_v3  ;;  %v3754_v5 = vunpack.i.l.bf16 %v3753_v3 }
 0x45f   : > { %v3526_v6 = vpack.c.bf16 %v3755_v4, %v3754_v5 }
 0x460   : > { %v1604_v2 = vpop.permute.xlu0 %1603 }
 0x461   : > { %3527 = vmatprep.subr.bf16.mxu1 %v3526_v6 }
 0x462   : > { %v3819_v7 = vpop.eup %3818  ;;  %3529 = vmatpush3.bf16.msra.mxu1 %v3526_v6 }
 0x463   : > { %v3821_v43 = vpop.eup %3820  ;;  %3532 = vmatprep.subr.msk.bf16.mxu1 %vm4446_vm1, %v4456_v39  ;;  %v1323_v45 = vmul.f32 %v3819_v7, %v3811_v56 }
 0x464   : > { %v1322_v0 = vmul.f32 %v3821_v43, %v3813_v20  ;;  %v1606_v32 = vpop.permute.xlu0 %1605 }
 0x466   : > { %3231 = vmatprep.mubr.msk.f32.mxu1 %vm1107_vm2, %v1322_v0 }
 0x467   : > { %3232 = vmatmul.mubr.msk.f32.vlgmr.msra.gmra.mrb[14].mxu1 %vm1107_vm2, %v1323_v45 }
 0x468   : > { %3238 = vmatprep.mubr.msk.f32.mxu1 %vm1019_vm0, %v576_v25 }
 0x46b   : > { %3535 = vmatpush3.bf16.xpose.msk.msra.mxu1 %vm4446_vm1, %v4456_v39 }
 0x472   : > { %3239 = vmatmul.mubr.msk.f32.vlgmr.msra.gmra.mrb[16].mxu1 %vm1019_vm0, %v580_v26 }
 0x4c3   : > { %v4582_v50 = vpop.f32.mrb[12].mxu1 }
 0x4c4   : > { %v4584_v8 = vpop.f32.mrb[13].mxu1 }
 0x53a   : > { %v4586_v9 = vpop.f32.mrb[14].mxu1 }
 0x53b   : > { %v4588_v10 = vpop.f32.mrb[15].mxu1 }
 0x545   : > { %v3240_v11 = vpop.f32.mrb[16].mxu1 }
 0x546   : > { %v1491_v12 = vpop.f32.mrb[17].mxu1  ;;  %v1503_v14 = vsel %vm1107_vm2, %v3240_v11, -inf }
 0x547   : > { %v1500_v13 = vsel %vm1107_vm2, %v1491_v12, -inf }
 0x548   : > { %1501 = vmax.xlane.f32.xlu1 %v1500_v13 }
 0x54c   : > { %1504 = vmax.xlane.f32.xlu1 %v1503_v14 }
 0x5d5   : > { %v1502_v15 = vpop.xlane.xlu1 %1501 }
 0x5d6   : > { %v1506_v39 = vsub.f32 %v1491_v12, %v1502_v15 }
 0x5d8   : > { %v1508_v18 = vmul.f32 1.442695, %v1506_v39  ;;  %v577_v39 = vmul.f32 0.088388346, %v4524_v40 }
 0x5d9   : > { %v1505_v16 = vpop.xlane.xlu1 %1504 }
 0x5da   : > { %v1507_v17 = vsub.f32 %v3240_v11, %v1505_v16  ;;  %v581_v16 = vmul.f32 0.088388346, %v4528_v44 }
 0x5dc   : > { %v1510_v48 = vmul.f32 1.442695, %v1507_v17 }
 0x5de   : > { %3822 = vpow2.f32 %v1510_v48 }
 0x5df   : > { %3824 = vpow2.f32 %v1508_v18 }
 0x5e8   : > { %v3823_v19 = vpop.eup %3822 }
 0x5e9   : > { %v1515_v56 = vsel %vm1107_vm2, %v3823_v19, 0.0  ;;  %v3825_v20 = vpop.eup %3824 }
 0x5ea   : > { %1516 = vadd.xlane.f32.xlu1 %v1515_v56  ;;  %v1512_v21 = vsel %vm1107_vm2, %v3825_v20, 0.0 }
 0x5ee   : > { %1513 = vadd.xlane.f32.xlu1 %v1512_v21 }
 0x5ff   : > { %3757 = vrot.lane.b32.xlu1 %v3756_v38, %s4106_s27 }
 0x677   : > { %v1517_v22 = vpop.xlane.xlu1 %1516 }
 0x678   : > { %3826 = vrcp.f32 %v1517_v22 }
 0x67b   : > { %v1514_v23 = vpop.xlane.xlu1 %1513 }
 0x67c   : > { %3828 = vrcp.f32 %v1514_v23 }
 0x67f   : > { %v3758_v24 = vpop.permute.xlu1 %3757 }
 0x680   : > { %v3760_v25 = vunpack.i.h.bf16 %v3758_v24  ;;  %v3759_v26 = vunpack.i.l.bf16 %v3758_v24 }
 0x682   : > { %v3540_v28 = vpack.c.bf16 %v3760_v25, %v3759_v26  ;;  %v3827_v1 = vpop.eup %3826 }
 0x683   : > { %v1521_v63 = vmul.f32 %v3827_v1, %v3823_v19 }
 0x684   : > { %3542 = vmatprep.subr.msk.bf16.mxu0 %vm4446_vm1, %v3540_v28 }
 0x686   : > { %v3829_v29 = vpop.eup %3828 }
 0x687   : > { %v1520_v31 = vmul.f32 %v3829_v29, %v3825_v20 }
 0x689   : > { %3245 = vmatprep.mubr.msk.f32.mxu0 %vm1107_vm2, %v1520_v31 }
 0x68a   : > { %3246 = vmatmul.mubr.msk.f32.vlgmr.msra.gmra.mrb[16].mxu0 %vm1107_vm2, %v1521_v63 }
 0x68b   : > { %3545 = vmatpush3.bf16.xpose.msk.msra.mxu0 %vm4446_vm1, %v3540_v28  ;;  %3252 = vmatprep.mubr.msk.f32.mxu0 %vm1019_vm0, %v1604_v2 }
 0x68c   : > { %3557 = vmatprep.subr.bf16.mxu0 %v4562_v59 }
 0x692   : > { %3253 = vmatmul.mubr.msk.f32.vlgmr.msra.gmra.mrb[18].mxu0 %vm1019_vm0, %v1606_v32 }
 0x693   : > { %3559 = vmatpush3.bf16.msra.mxu0 %v4562_v59 }
 0x75d   : > { %v4608_v36 = vpop.f32.mrb[16].mxu0 }
 0x75e   : > { %v4610_v38 = vpop.f32.mrb[17].mxu0 }
 0x765   : > { %v3254_v3 = vpop.f32.mrb[18].mxu0 }
 0x766   : > { %v1685_v4 = vpop.f32.mrb[19].mxu0  ;;  %v1697_v5 = vsel %vm1107_vm2, %v3254_v3, -inf }
 0x767   : > { %1698 = vmax.xlane.f32.xlu1 %v1697_v5  ;;  %v1694_v6 = vsel %vm1107_vm2, %v1685_v4, -inf }
 0x768   : > { %1695 = vmax.xlane.f32.xlu0 %v1694_v6 }
 0x7f4   : > { %v1699_v7 = vpop.xlane.xlu1 %1698 }
 0x7f5   : > { %v1701_v43 = vsub.f32 %v3254_v3, %v1699_v7  ;;  %v1696_v0 = vpop.xlane.xlu0 %1695 }
 0x7f6   : > { %v1700_v45 = vsub.f32 %v1685_v4, %v1696_v0 }
 0x7f7   : > { %v1704_v11 = vmul.f32 1.442695, %v1701_v43 }
 0x7f8   : > { %v1702_v12 = vmul.f32 1.442695, %v1700_v45 }
 0x7f9   : > { %3830 = vpow2.f32 %v1704_v11 }
 0x7fa   : > { %3832 = vpow2.f32 %v1702_v12 }
 0x803   : > { %v3831_v59 = vpop.eup %3830 }
 0x804   : > { %v1709_v13 = vsel %vm1107_vm2, %v3831_v59, 0.0  ;;  %v3833_v14 = vpop.eup %3832 }
 0x805   : > { %1710 = vadd.xlane.f32.xlu0 %v1709_v13  ;;  %v1706_v15 = vsel %vm1107_vm2, %v3833_v14, 0.0 }
 0x809   : > { %1707 = vadd.xlane.f32.xlu0 %v1706_v15 }
 0x81f   : > { %3762 = vrot.lane.b32.xlu0 %v3761_v47, %s4106_s27 }
 0x823   : > { %1995 = vrot.lane.b32.xlu0 %v577_v39, %s4106_s27 }
 0x827   : > { %1997 = vrot.lane.b32.xlu0 %v581_v16, %s4106_s27 }
 0x892   : > { %v1711_v17 = vpop.xlane.xlu0 %1710 }
 0x893   : > { %3834 = vrcp.f32 %v1711_v17 }
 0x896   : > { %v1708_v18 = vpop.xlane.xlu0 %1707 }
 0x897   : > { %3836 = vrcp.f32 %v1708_v18 }
 0x89a   : > { %v3763_v48 = vpop.permute.xlu0 %3762 }
 0x89b   : > { %v3765_v19 = vunpack.i.h.bf16 %v3763_v48  ;;  %v3764_v56 = vunpack.i.l.bf16 %v3763_v48 }
 0x89d   : > { %v3546_v20 = vpack.c.bf16 %v3765_v19, %v3764_v56  ;;  %v3835_v21 = vpop.eup %3834 }
 0x89e   : > { %v1715_v47 = vmul.f32 %v3835_v21, %v3831_v59  ;;  %v1996_v15 = vpop.permute.xlu0 %1995 }
 0x89f   : > { %3547 = vmatprep.subr.bf16.mxu1 %v3546_v20 }
 0x8a0   : > { %3549 = vmatpush3.bf16.msra.mxu1 %v3546_v20 }
 0x8a1   : > { %v3837_v41 = vpop.eup %3836  ;;  %3552 = vmatprep.subr.msk.bf16.mxu1 %vm4446_vm1, %v4542_v49 }
 0x8a2   : > { %v1714_v46 = vmul.f32 %v3837_v41, %v3833_v14  ;;  %v1998_v33 = vpop.permute.xlu0 %1997 }
 0x8a4   : > { %3259 = vmatprep.mubr.msk.f32.mxu1 %vm1107_vm2, %v1714_v46 }
 0x8a5   : > { %3260 = vmatmul.mubr.msk.f32.vlgmr.msra.gmra.mrb[18].mxu1 %vm1107_vm2, %v1715_v47 }
 0x8a6   : > { %3266 = vmatprep.mubr.msk.f32.mxu1 %vm1019_vm0, %v577_v39 }
 0x8a9   : > { %3555 = vmatpush3.bf16.xpose.msk.msra.mxu1 %vm4446_vm1, %v4542_v49 }
 0x8b0   : > { %3267 = vmatmul.mubr.msk.f32.vlgmr.msra.gmra.mrb[20].mxu1 %vm1019_vm0, %v581_v16 }
 0x978   : > { %v4634_v40 = vpop.f32.mrb[18].mxu1 }
 0x979   : > { %v3796_v44 = vpack.i.bf16 %v4586_v9, %v4634_v40  ;;  %v4638_v22 = vpop.f32.mrb[19].mxu1  ;;  %v2647_v9 = vld [vmem:[#allocation10 + $0x90] sm:$0xff]  ;;  %v2648_v40 = vld [vmem:[#allocation10 + $0x98] sm:$0xff] }
 0x97a   : > { %v3786_v23 = vpack.i.bf16 %v4588_v10, %v4638_v22 }
 0x983   : > { %v3268_v24 = vpop.f32.mrb[20].mxu1 }
 0x984   : > { %v1883_v25 = vpop.f32.mrb[21].mxu1  ;;  %v1895_v28 = vsel %vm1107_vm2, %v3268_v24, -inf }
 0x985   : > { %v1892_v26 = vsel %vm1107_vm2, %v1883_v25, -inf }
 0x986   : > { %1893 = vmax.xlane.f32.xlu1 %v1892_v26  ;;  %v582_v26 = vmul.f32 0.088388346, %v4530_v27 }
 0x98a   : > { %1896 = vmax.xlane.f32.xlu1 %v1895_v28 }
 0xa13   : > { %v1894_v49 = vpop.xlane.xlu1 %1893 }
 0xa14   : > { %v1898_v1 = vsub.f32 %v1883_v25, %v1894_v49  ;;  %v578_v25 = vmul.f32 0.088388346, %v4526_v42 }
 0xa16   : > { %v1900_v63 = vmul.f32 1.442695, %v1898_v1 }
 0xa17   : > { %v1897_v29 = vpop.xlane.xlu1 %1896 }
 0xa18   : > { %v1899_v31 = vsub.f32 %v3268_v24, %v1897_v29 }
 0xa1a   : > { %v1902_v2 = vmul.f32 1.442695, %v1899_v31 }
 0xa1c   : > { %3838 = vpow2.f32 %v1902_v2 }
 0xa1d   : > { %3840 = vpow2.f32 %v1900_v63 }
 0xa26   : > { %v3839_v32 = vpop.eup %3838 }
 0xa27   : > { %v1907_v3 = vsel %vm1107_vm2, %v3839_v32, 0.0  ;;  %v3841_v4 = vpop.eup %3840 }
 0xa28   : > { %1908 = vadd.xlane.f32.xlu1 %v1907_v3  ;;  %v1904_v5 = vsel %vm1107_vm2, %v3841_v4, 0.0 }
 0xa2c   : > { %1905 = vadd.xlane.f32.xlu1 %v1904_v5 }
 0xa3d   : > { %3767 = vrot.lane.b32.xlu1 %v3766_v37, %s4106_s27 }
 0xab5   : > { %v1909_v6 = vpop.xlane.xlu1 %1908 }
 0xab6   : > { %3842 = vrcp.f32 %v1909_v6 }
 0xab9   : > { %v1906_v7 = vpop.xlane.xlu1 %1905 }
 0xaba   : > { %3844 = vrcp.f32 %v1906_v7 }
 0xabd   : > { %v3768_v43 = vpop.permute.xlu1 %3767 }
 0xabe   : > { %v3770_v0 = vunpack.i.h.bf16 %v3768_v43  ;;  %v3769_v45 = vunpack.i.l.bf16 %v3768_v43 }
 0xac0   : > { %v3560_v11 = vpack.c.bf16 %v3770_v0, %v3769_v45  ;;  %v3843_v12 = vpop.eup %3842 }
 0xac1   : > { %v1913_v14 = vmul.f32 %v3843_v12, %v3839_v32 }
 0xac2   : > { %3562 = vmatprep.subr.msk.bf16.mxu0 %vm4446_vm1, %v3560_v11 }
 0xac4   : > { %v3845_v59 = vpop.eup %3844 }
 0xac5   : > { %v1912_v13 = vmul.f32 %v3845_v59, %v3841_v4 }
 0xac7   : > { %3273 = vmatprep.mubr.msk.f32.mxu0 %vm1107_vm2, %v1912_v13 }
 0xac8   : > { %3274 = vmatmul.mubr.msk.f32.vlgmr.msra.gmra.mrb[20].mxu0 %vm1107_vm2, %v1913_v14 }
 0xac9   : > { %3565 = vmatpush3.bf16.xpose.msk.msra.mxu0 %vm4446_vm1, %v3560_v11  ;;  %3280 = vmatprep.mubr.msk.f32.mxu0 %vm1019_vm0, %v1996_v15 }
 0xaca   : > { %3577 = vmatprep.subr.bf16.mxu0 %v4570_v62 }
 0xad0   : > { %3281 = vmatmul.mubr.msk.f32.vlgmr.msra.gmra.mrb[22].mxu0 %vm1019_vm0, %v1998_v33 }
 0xad1   : > { %3579 = vmatpush3.bf16.msra.mxu0 %v4570_v62 }
 0xb9b   : > { %v4660_v35 = vpop.f32.mrb[20].mxu0 }
 0xb9c   : > { %v4662_v37 = vpop.f32.mrb[21].mxu0 }
 0xba3   : > { %v3282_v39 = vpop.f32.mrb[22].mxu0 }
 0xba4   : > { %v2077_v16 = vpop.f32.mrb[23].mxu0  ;;  %v2089_v17 = vsel %vm1107_vm2, %v3282_v39, -inf }
 0xba5   : > { %2090 = vmax.xlane.f32.xlu1 %v2089_v17  ;;  %v2086_v18 = vsel %vm1107_vm2, %v2077_v16, -inf }
 0xba6   : > { %2087 = vmax.xlane.f32.xlu0 %v2086_v18 }
 0xc32   : > { %v2091_v48 = vpop.xlane.xlu1 %2090 }
 0xc33   : > { %v2093_v19 = vsub.f32 %v3282_v39, %v2091_v48  ;;  %v2088_v56 = vpop.xlane.xlu0 %2087 }
 0xc34   : > { %v2092_v20 = vsub.f32 %v2077_v16, %v2088_v56 }
 0xc35   : > { %v2096_v21 = vmul.f32 1.442695, %v2093_v19 }
 0xc36   : > { %v2094_v41 = vmul.f32 1.442695, %v2092_v20 }
 0xc37   : > { %3846 = vpow2.f32 %v2096_v21 }
 0xc38   : > { %3848 = vpow2.f32 %v2094_v41 }
 0xc41   : > { %v3847_v62 = vpop.eup %3846 }
 0xc42   : > { %v2101_v46 = vsel %vm1107_vm2, %v3847_v62, 0.0  ;;  %v3849_v47 = vpop.eup %3848 }
 0xc43   : > { %2102 = vadd.xlane.f32.xlu0 %v2101_v46  ;;  %v2098_v24 = vsel %vm1107_vm2, %v3849_v47, 0.0 }
 0xc47   : > { %2099 = vadd.xlane.f32.xlu0 %v2098_v24 }
 0xc5d   : > { %3772 = vrot.lane.b32.xlu0 %v3771_v58, %s4106_s27 }
 0xc61   : > { %2387 = vrot.lane.b32.xlu0 %v578_v25, %s4106_s27 }
 0xc65   : > { %2389 = vrot.lane.b32.xlu0 %v582_v26, %s4106_s27 }
 0xcd0   : > { %v2103_v28 = vpop.xlane.xlu0 %2102 }
 0xcd1   : > { %3850 = vrcp.f32 %v2103_v28 }
 0xcd4   : > { %v2100_v49 = vpop.xlane.xlu0 %2099 }
 0xcd5   : > { %3852 = vrcp.f32 %v2100_v49 }
 0xcd8   : > { %v3773_v1 = vpop.permute.xlu0 %3772 }
 0xcd9   : > { %v3775_v29 = vunpack.i.h.bf16 %v3773_v1  ;;  %v3774_v31 = vunpack.i.l.bf16 %v3773_v1 }
 0xcdb   : > { %v3566_v63 = vpack.c.bf16 %v3775_v29, %v3774_v31  ;;  %v3851_v2 = vpop.eup %3850 }
 0xcdc   : > { %v2107_v27 = vmul.f32 %v3851_v2, %v3847_v62  ;;  %v2388_v20 = vpop.permute.xlu0 %2387  ;;  %v2646_v2 = vld [vmem:[#allocation10 + $0x88] sm:$0xff] }
 0xcdd   : > { %3567 = vmatprep.subr.bf16.mxu1 %v3566_v63 }
 0xcde   : > { %3569 = vmatpush3.bf16.msra.mxu1 %v3566_v63  ;;  %v2645_v63 = vld [vmem:[#allocation10 + $0x80] sm:$0xff] }
 0xcdf   : > { %v3853_v54 = vpop.eup %3852  ;;  %3572 = vmatprep.subr.msk.bf16.mxu1 %vm4446_vm1, %v4550_v53 }
 0xce0   : > { %v2106_v42 = vmul.f32 %v3853_v54, %v3849_v47  ;;  %v2390_v30 = vpop.permute.xlu0 %2389 }
 0xce2   : > { %3287 = vmatprep.mubr.msk.f32.mxu1 %vm1107_vm2, %v2106_v42 }
 0xce3   : > { %3288 = vmatmul.mubr.msk.f32.vlgmr.msra.gmra.mrb[22].mxu1 %vm1107_vm2, %v2107_v27 }
 0xce4   : > { %3294 = vmatprep.mubr.msk.f32.mxu1 %vm1019_vm0, %v578_v25 }
 0xce7   : > { %3575 = vmatpush3.bf16.xpose.msk.msra.mxu1 %vm4446_vm1, %v4550_v53 }
 0xcee   : > { %3295 = vmatmul.mubr.msk.f32.vlgmr.msra.gmra.mrb[24].mxu1 %vm1019_vm0, %v582_v26 }
 0xdb6   : > { %v4686_v57 = vpop.f32.mrb[22].mxu1 }
 0xdb7   : > { %v4688_v58 = vpop.f32.mrb[23].mxu1 }
 0xdc1   : > { %v3296_v32 = vpop.f32.mrb[24].mxu1 }
 0xdc2   : > { %v2275_v3 = vpop.f32.mrb[25].mxu1  ;;  %v2287_v5 = vsel %vm1107_vm2, %v3296_v32, -inf }
 0xdc3   : > { %v2284_v4 = vsel %vm1107_vm2, %v2275_v3, -inf }
 0xdc4   : > { %2285 = vmax.xlane.f32.xlu1 %v2284_v4 }
 0xdc8   : > { %2288 = vmax.xlane.f32.xlu1 %v2287_v5 }
 0xe51   : > { %v2286_v6 = vpop.xlane.xlu1 %2285 }
 0xe52   : > { %v2290_v7 = vsub.f32 %v2275_v3, %v2286_v6  ;;  %v3592_v6 = vpack.c.bf16 %v2630_v60, %v2629_v55 }
 0xe54   : > { %v2292_v45 = vmul.f32 1.442695, %v2290_v7 }
 0xe55   : > { %v2289_v43 = vpop.xlane.xlu1 %2288 }
 0xe56   : > { %v2291_v0 = vsub.f32 %v3296_v32, %v2289_v43  ;;  %v3590_v32 = vpack.c.bf16 %v2646_v2, %v2645_v63  ;;  %v3594_v43 = vpack.c.bf16 %v2648_v40, %v2647_v9  ;;  %v2643_v63 = vld [vmem:[#allocation10 + $0x70] sm:$0xff]  ;;  %v2644_v2 = vld [vmem:[#allocation10 + $0x78] sm:$0xff]  ;;  %v2677_v40 = vld [vmem:[#allocation10 + $0x180] sm:$0xff] }
 0xe58   : > { %v2294_v53 = vmul.f32 1.442695, %v2291_v0  ;;  %v2631_v0 = vld [vmem:[#allocation10 + $0x10] sm:$0xff] }
 0xe5a   : > { %3854 = vpow2.f32 %v2294_v53  ;;  %v2649_v53 = vld [vmem:[#allocation10 + $0xa0] sm:$0xff] }
 0xe5b   : > { %3856 = vpow2.f32 %v2292_v45  ;;  %v2632_v45 = vld [vmem:[#allocation10 + $0x18] sm:$0xff] }
 0xe64   : > { %v3855_v11 = vpop.eup %3854 }
 0xe65   : > { %v2299_v12 = vsel %vm1107_vm2, %v3855_v11, 0.0  ;;  %v3857_v59 = vpop.eup %3856 }
 0xe66   : > { %2300 = vadd.xlane.f32.xlu1 %v2299_v12  ;;  %v2296_v13 = vsel %vm1107_vm2, %v3857_v59, 0.0 }
 0xe6a   : > { %2297 = vadd.xlane.f32.xlu1 %v2296_v13 }
 0xe7b   : > { %3777 = vrot.lane.b32.xlu1 %v3776_v52, %s4106_s27 }
 0xef3   : > { %v2301_v14 = vpop.xlane.xlu1 %2300 }
 0xef4   : > { %3858 = vrcp.f32 %v2301_v14  ;;  %v2633_v14 = vld [vmem:[#allocation10 + $0x20] sm:$0xff] }
 0xef7   : > { %v2298_v15 = vpop.xlane.xlu1 %2297 }
 0xef8   : > { %3860 = vrcp.f32 %v2298_v15  ;;  %v2634_v15 = vld [vmem:[#allocation10 + $0x28] sm:$0xff] }
 0xefb   : > { %v3778_v33 = vpop.permute.xlu1 %3777 }
 0xefc   : > { %v3780_v39 = vunpack.i.h.bf16 %v3778_v33  ;;  %v3779_v16 = vunpack.i.l.bf16 %v3778_v33  ;;  %v2651_v33 = vld [vmem:[#allocation10 + $0xb0] sm:$0xff] }
 0xefe   : > { %v3580_v17 = vpack.c.bf16 %v3780_v39, %v3779_v16  ;;  %v3859_v18 = vpop.eup %3858  ;;  %v2652_v39 = vld [vmem:[#allocation10 + $0xb8] sm:$0xff]  ;;  %v3600_v16 = vpack.c.bf16 %v2634_v15, %v2633_v14 }
 0xeff   : > { %v2305_v56 = vmul.f32 %v3859_v18, %v3855_v11  ;;  %v2650_v11 = vld [vmem:[#allocation10 + $0xa8] sm:$0xff]  ;;  %v2635_v18 = vld [vmem:[#allocation10 + $0x30] sm:$0xff]  ;;  %v2684_v14 = vld [vmem:[#allocation10 + $0x1b8] sm:$0xff] }
 0xf00   : > { %3582 = vmatprep.subr.msk.bf16.mxu0 %vm4446_vm1, %v3580_v17  ;;  %v3598_v13 = vpack.c.bf16 %v2650_v11, %v2649_v53  ;;  %v2681_v53 = vld [vmem:[#allocation10 + $0x1a0] sm:$0xff]  ;;  %v2682_v11 = vld [vmem:[#allocation10 + $0x1a8] sm:$0xff] }
 0xf02   : > { %v3861_v48 = vpop.eup %3860 }
 0xf03   : > { %v2304_v19 = vmul.f32 %v3861_v48, %v3857_v59  ;;  %v3596_v59 = vpack.c.bf16 %v2632_v45, %v2631_v0  ;;  %v2636_v48 = vld [vmem:[#allocation10 + $0x38] sm:$0xff]  ;;  %v2663_v45 = vld [vmem:[#allocation10 + $0x110] sm:$0xff] }
 0xf05   : > { %3301 = vmatprep.mubr.msk.f32.mxu0 %vm1107_vm2, %v2304_v19  ;;  %v2653_v19 = vld [vmem:[#allocation10 + $0xc0] sm:$0xff] }
 0xf06   : > { %3302 = vmatmul.mubr.msk.f32.vlgmr.msra.gmra.mrb[24].mxu0 %vm1107_vm2, %v2305_v56  ;;  %v2654_v56 = vld [vmem:[#allocation10 + $0xc8] sm:$0xff] }
 0xf07   : > { %3585 = vmatpush3.bf16.xpose.msk.msra.mxu0 %vm4446_vm1, %v3580_v17  ;;  %3308 = vmatprep.mubr.msk.f32.mxu0 %vm1019_vm0, %v2388_v20  ;;  %v3602_v17 = vpack.c.bf16 %v2652_v39, %v2651_v33  ;;  %v3604_v20 = vpack.c.bf16 %v2636_v48, %v2635_v18  ;;  %v2667_v39 = vld [vmem:[#allocation10 + $0x130] sm:$0xff]  ;;  %v2686_v18 = vld [vmem:[#allocation10 + $0x1c8] sm:$0xff] }
 0xf0e   : > { %3309 = vmatmul.mubr.msk.f32.vlgmr.msra.gmra.mrb[26].mxu0 %vm1019_vm0, %v2390_v30  ;;  %v2637_v30 = vld [vmem:[#allocation10 + $0x40] sm:$0xff] }
 0xfd9   : > { %v4706_v51 = vpop.f32.mrb[24].mxu0 }
 0xfda   : > { %v4708_v52 = vpop.f32.mrb[25].mxu0 }
 0xfe1   : > { %v3310_v21 = vpop.f32.mrb[26].mxu0 }
 0xfe2   : > { %v2469_v41 = vpop.f32.mrb[27].mxu0  ;;  %v2481_v62 = vsel %vm1107_vm2, %v3310_v21, -inf }
 0xfe3   : > { %2482 = vmax.xlane.f32.xlu1 %v2481_v62  ;;  %v2478_v46 = vsel %vm1107_vm2, %v2469_v41, -inf  ;;  %v2656_v62 = vld [vmem:[#allocation10 + $0xd8] sm:$0xff] }
 0xfe4   : > { %2479 = vmax.xlane.f32.xlu0 %v2478_v46 }
 0xff4   : > { %3787 = vrot.lane.b32.xlu1 %v3786_v23, %s4106_s27 }
0x1070   : > { %v2483_v34 = vpop.xlane.xlu1 %2482 }
0x1071   : > { %v2485_v47 = vsub.f32 %v3310_v21, %v2483_v34  ;;  %v2480_v24 = vpop.xlane.xlu0 %2479  ;;  %v2638_v21 = vld [vmem:[#allocation10 + $0x48] sm:$0xff] }
0x1072   : > { %v2484_v25 = vsub.f32 %v2469_v41, %v2480_v24  ;;  %v2655_v41 = vld [vmem:[#allocation10 + $0xd0] sm:$0xff]  ;;  %v3608_v46 = vpack.c.bf16 %v2638_v21, %v2637_v30  ;;  %v2640_v24 = vld [vmem:[#allocation10 + $0x58] sm:$0xff] }
0x1073   : > { %v2488_v26 = vmul.f32 1.442695, %v2485_v47  ;;  %v3610_v34 = vpack.c.bf16 %v2656_v62, %v2655_v41  ;;  %v2639_v47 = vld [vmem:[#allocation10 + $0x50] sm:$0xff]  ;;  %v2688_v30 = vld [vmem:[#allocation10 + $0x1d8] sm:$0xff] }
0x1074   : > { %v2486_v28 = vmul.f32 1.442695, %v2484_v25  ;;  %v4726_v3 = vpop.permute.xlu1 %3787  ;;  %v2657_v25 = vld [vmem:[#allocation10 + $0xe0] sm:$0xff]  ;;  %v2671_v62 = vld [vmem:[#allocation10 + $0x150] sm:$0xff] }
0x1075   : > { %3862 = vpow2.f32 %v2488_v26  ;;  %v3789_v4 = vunpack.i.l.bf16 %v4726_v3  ;;  %v2658_v26 = vld [vmem:[#allocation10 + $0xe8] sm:$0xff] }
0x1076   : > { %3864 = vpow2.f32 %v2486_v28  ;;  %v3612_v28 = vpack.c.bf16 %v2640_v24, %v2639_v47  ;;  %v2690_v47 = vld [vmem:[#allocation10 + $0x1e8] sm:$0xff] }
0x1077   : > { %v2623_v12 = vsel %vm1019_vm0, %v4610_v38, %v3789_v4  ;;  %v3606_v38 = vpack.c.bf16 %v2654_v56, %v2653_v19  ;;  %v2661_v4 = vld [vmem:[#allocation10 + $0x100] sm:$0xff] }
0x1078   : > { %v2669_v56 = vld [vmem:[#allocation10 + $0x140] sm:$0xff] }
0x107f   : > { %v3863_v49 = vpop.eup %3862 }
0x1080   : > { %v2493_v1 = vsel %vm1107_vm2, %v3863_v49, 0.0  ;;  %v3865_v29 = vpop.eup %3864 }
0x1081   : > { %2494 = vadd.xlane.f32.xlu0 %v2493_v1  ;;  %v2490_v31 = vsel %vm1107_vm2, %v3865_v29, 0.0  ;;  %v2641_v1 = vld [vmem:[#allocation10 + $0x60] sm:$0xff] }
0x1085   : > { %2491 = vadd.xlane.f32.xlu0 %v2490_v31  ;;  %v2659_v31 = vld [vmem:[#allocation10 + $0xf0] sm:$0xff] }
0x109b   : > { %3782 = vrot.lane.b32.xlu0 %v3781_v61, %s4106_s27 }
0x109f   : > { %3797 = vrot.lane.b32.xlu0 %v3796_v44, %s4106_s27 }
0x110e   : > { %v2495_v10 = vpop.xlane.xlu0 %2494 }
0x110f   : > { %3866 = vrcp.f32 %v2495_v10  ;;  %v2660_v10 = vld [vmem:[#allocation10 + $0xf8] sm:$0xff] }
0x1112   : > { %v2492_v22 = vpop.xlane.xlu0 %2491 }
0x1113   : > { %3868 = vrcp.f32 %v2492_v22 }
0x1116   : > { %v3783_v23 = vpop.permute.xlu0 %3782 }
0x1117   : > { %v3785_v54 = vunpack.i.h.bf16 %v3783_v23  ;;  %v3784_v42 = vunpack.i.l.bf16 %v3783_v23  ;;  %v3618_v23 = vpack.c.bf16 %v2660_v10, %v2659_v31  ;;  %v2675_v10 = vld [vmem:[#allocation10 + $0x170] sm:$0xff] }
0x1119   : > { %v3586_v27 = vpack.c.bf16 %v3785_v54, %v3784_v42  ;;  %v3867_v61 = vpop.eup %3866  ;;  %v3620_v42 = vpack.c.bf16 %v2644_v2, %v2643_v63 }
0x111a   : > { %v2499_v7 = vmul.f32 %v3867_v61, %v3863_v49  ;;  %v3614_v49 = vpack.c.bf16 %v2658_v26, %v2657_v25  ;;  %v3798_v54 = vpop.permute.xlu0 %3797  ;;  %v2673_v26 = vld [vmem:[#allocation10 + $0x160] sm:$0xff] }
0x111b   : > { %3587 = vmatprep.subr.bf16.mxu1 %v3586_v27  ;;  %v3800_v55 = vunpack.i.h.bf16 %v3798_v54 }
0x111c   : > { %3589 = vmatpush3.bf16.msra.mxu1 %v3586_v27  ;;  %v3790_v27 = vunpack.i.h.bf16 %v4726_v3  ;;  %v2662_v3 = vld [vmem:[#allocation10 + $0x108] sm:$0xff] }
0x111d   : > { %v3869_v44 = vpop.eup %3868  ;;  %3591 = vmatprep.subr.bf16.mxu1 %v3590_v32  ;;  %v3799_v32 = vunpack.i.l.bf16 %v3798_v54  ;;  %v2622_v9 = vsel %vm1019_vm0, %v4582_v50, %v3800_v55  ;;  %v2665_v50 = vld [vmem:[#allocation10 + $0x120] sm:$0xff] }
0x111e   : > { %v2498_v5 = vmul.f32 %v3869_v44, %v3865_v29  ;;  %v2642_v29 = vld [vmem:[#allocation10 + $0x68] sm:$0xff]  ;;  %v2621_v60 = vsel %vm1019_vm0, %v4584_v8, %v3790_v27  ;;  %v2664_v8 = vld [vmem:[#allocation10 + $0x118] sm:$0xff] }
0x111f   : > { %v3616_v22 = vpack.c.bf16 %v2642_v29, %v2641_v1  ;;  %v2624_v61 = vsel %vm1019_vm0, %v4608_v36, %v3799_v32  ;;  %v2678_v44 = vld [vmem:[#allocation10 + $0x188] sm:$0xff]  ;;  %v3628_v36 = vpack.c.bf16 %v2664_v8, %v2663_v45  ;;  %v2691_v1 = vld [vmem:[#allocation10 + $0x1f0] sm:$0xff]  ;;  %v2692_v29 = vld [vmem:[#allocation10 + $0x1f8] sm:$0xff] }
0x1120   : > { %3315 = vmatprep.mubr.msk.f32.mxu1 %vm1107_vm2, %v2498_v5  ;;  %v3622_v5 = vpack.c.bf16 %v2678_v44, %v2677_v40  ;;  %v3650_v31 = vpack.c.bf16 %v2692_v29, %v2691_v1 }
0x1121   : > { %3316 = vmatmul.mubr.msk.f32.vlgmr.msra.gmra.mrb[26].mxu1 %vm1107_vm2, %v2499_v7  ;;  %v2680_v7 = vld [vmem:[#allocation10 + $0x198] sm:$0xff] }
0x1122   : > { %3593 = vmatpush3.bf16.msra.mxu1 %v3592_v6  ;;  %2764 = vmatprep.mubr.f32.mxu1 %v2623_v12  ;;  %v2679_v6 = vld [vmem:[#allocation10 + $0x190] sm:$0xff]  ;;  %v3630_v12 = vpack.c.bf16 %v2682_v11, %v2681_v53 }
0x1123   : > { %3595 = vmatprep.subr.bf16.mxu1 %v3594_v43  ;;  %v3624_v43 = vpack.c.bf16 %v2662_v3, %v2661_v4  ;;  %v3626_v0 = vpack.c.bf16 %v2680_v7, %v2679_v6  ;;  %3623 = vmatprep.subr.bf16.mxu0 %v3622_v5 }
0x1125   : > { %3625 = vmatpush3.bf16.msra.mxu0 %v3624_v43 }
0x1126   : > { %3597 = vmatpush3.bf16.msra.mxu1 %v3596_v59  ;;  %3627 = vmatprep.subr.bf16.mxu0 %v3626_v0  ;;  %v2666_v59 = vld [vmem:[#allocation10 + $0x128] sm:$0xff] }
0x1127   : > { %3599 = vmatprep.subr.bf16.mxu1 %v3598_v13  ;;  %v2683_v13 = vld [vmem:[#allocation10 + $0x1b0] sm:$0xff]  ;;  %v3632_v15 = vpack.c.bf16 %v2666_v59, %v2665_v50 }
0x1128   : > { %v3634_v33 = vpack.c.bf16 %v2684_v14, %v2683_v13 }
0x1129   : > { %3629 = vmatpush3.bf16.msra.mxu0 %v3628_v36 }
0x112a   : > { %3601 = vmatpush3.bf16.msra.mxu1 %v3600_v16  ;;  %3631 = vmatprep.subr.bf16.mxu0 %v3630_v12  ;;  %v2668_v16 = vld [vmem:[#allocation10 + $0x138] sm:$0xff] }
0x112b   : > { %3603 = vmatprep.subr.bf16.mxu1 %v3602_v17  ;;  %v2685_v17 = vld [vmem:[#allocation10 + $0x1c0] sm:$0xff]  ;;  %v3636_v48 = vpack.c.bf16 %v2668_v16, %v2667_v39 }
0x112c   : > { %v3638_v19 = vpack.c.bf16 %v2686_v18, %v2685_v17 }
0x112d   : > { %3633 = vmatpush3.bf16.msra.mxu0 %v3632_v15 }
0x112e   : > { %3605 = vmatpush3.bf16.msra.mxu1 %v3604_v20  ;;  %3635 = vmatprep.subr.bf16.mxu0 %v3634_v33  ;;  %v2670_v20 = vld [vmem:[#allocation10 + $0x148] sm:$0xff] }
0x112f   : > { %3607 = vmatprep.subr.bf16.mxu1 %v3606_v38  ;;  %v2687_v38 = vld [vmem:[#allocation10 + $0x1d0] sm:$0xff]  ;;  %v3640_v21 = vpack.c.bf16 %v2670_v20, %v2669_v56 }
0x1130   : > { %v3642_v41 = vpack.c.bf16 %v2688_v30, %v2687_v38 }
0x1131   : > { %3637 = vmatpush3.bf16.msra.mxu0 %v3636_v48 }
0x1132   : > { %3609 = vmatpush3.bf16.msra.mxu1 %v3608_v46  ;;  %3639 = vmatprep.subr.bf16.mxu0 %v3638_v19  ;;  %v2672_v46 = vld [vmem:[#allocation10 + $0x158] sm:$0xff] }
0x1133   : > { %3611 = vmatprep.subr.bf16.mxu1 %v3610_v34  ;;  %v2689_v34 = vld [vmem:[#allocation10 + $0x1e0] sm:$0xff]  ;;  %v3644_v24 = vpack.c.bf16 %v2672_v46, %v2671_v62 }
0x1134   : > { %v3646_v25 = vpack.c.bf16 %v2690_v47, %v2689_v34 }
0x1135   : > { %3641 = vmatpush3.bf16.msra.mxu0 %v3640_v21 }
0x1136   : > { %3613 = vmatpush3.bf16.msra.mxu1 %v3612_v28  ;;  %3643 = vmatprep.subr.bf16.mxu0 %v3642_v41  ;;  %v2674_v28 = vld [vmem:[#allocation10 + $0x168] sm:$0xff] }
0x1137   : > { %3615 = vmatprep.subr.bf16.mxu1 %v3614_v49  ;;  %v3648_v49 = vpack.c.bf16 %v2674_v28, %v2673_v26 }
0x1139   : > { %3645 = vmatpush3.bf16.msra.mxu0 %v3644_v24 }
0x113a   : > { %3617 = vmatpush3.bf16.msra.mxu1 %v3616_v22  ;;  %3647 = vmatprep.subr.bf16.mxu0 %v3646_v25  ;;  %v2676_v22 = vld [vmem:[#allocation10 + $0x178] sm:$0xff] }
0x113b   : > { %3619 = vmatprep.subr.bf16.mxu1 %v3618_v23  ;;  %v3652_v23 = vpack.c.bf16 %v2676_v22, %v2675_v10 }
0x113d   : > { %3649 = vmatpush3.bf16.msra.mxu0 %v3648_v49 }
0x113e   : > { %3621 = vmatpush3.bf16.msra.mxu1 %v3620_v42  ;;  %3651 = vmatprep.subr.bf16.mxu0 %v3650_v31 }
0x1141   : > { %2765 = vmatmul.mubr.f32.vlgmr.msra.gmra.mrb[28].mxu1 %v2621_v60  ;;  %3653 = vmatpush3.bf16.msra.mxu0 %v3652_v23 }
0x1142   : > { %2769 = vmatprep.mubr.f32.mxu1 %v2624_v61 }
0x1145   : > { %2770 = vmatmul.mubr.f32.gmra.mrb[30].mxu1 %v2622_v9 }
0x11f4   : > { %v3317_v63 = vpop.f32.mrb[26].mxu1 }
0x11f5   : > { %v3801_v2 = vpack.i.bf16 %v4686_v57, %v3317_v63  ;;  %v2580_v54 = vpop.f32.mrb[27].mxu1 }
0x11f6   : > { %v3791_v42 = vpack.i.bf16 %v4688_v58, %v2580_v54 }
0x11f8   : > { %3792 = vrot.lane.b32.xlu1 %v3791_v42, %s4106_s27 }
0x11fc   : > { %3802 = vrot.lane.b32.xlu1 %v3801_v2, %s4106_s27 }
0x1214   : > { %v3162_v27 = vpop.f32.mrb[28].mxu1 }
0x1215   : > { %v3163_v32 = vpop.f32.mrb[29].mxu1 }
0x1216   : > { %v3164_v55 = vadd.f32 %v3163_v32, %v3162_v27 }
0x1218   : > { %v3165_v60 = vpop.f32.mrb[30].mxu1 }
0x1219   : > { %v3166_v61 = vpop.f32.mrb[31].mxu1 }
0x121a   : > { %v3167_v9 = vadd.f32 %v3166_v61, %v3165_v60 }
0x126a   : > { %v3793_v40 = vpop.permute.xlu1 %3792 }
0x126b   : > { %v3795_v44 = vunpack.i.h.bf16 %v3793_v40  ;;  %v3794_v4 = vunpack.i.l.bf16 %v3793_v40 }
0x126d   : > { %v2627_v5 = vsel %vm1019_vm0, %v4708_v52, %v3794_v4  ;;  %v2625_v57 = vsel %vm1019_vm0, %v4662_v37, %v3795_v44  ;;  %v3057_v52 = vld [vmem:[%s4811_s5] ss:$0 sm:$0xff] }
0x126e   : > { %v3803_v58 = vpop.permute.xlu1 %3802  ;;  %2839 = vmatprep.mubr.f32.mxu0 %v2627_v5  ;;  %v2767_v45 = vadd.f32 %v3164_v55, %v3057_v52  ;;  %v2772_v36 = vadd.f32 %v3167_v9, %v3057_v52 }
0x126f   : > { %v3805_v3 = vunpack.i.h.bf16 %v3803_v58  ;;  %v3804_v6 = vunpack.i.l.bf16 %v3803_v58  ;;  %2840 = vmatmul.mubr.f32.vlgmr.msra.gmra.mrb[28].mxu0 %v2625_v57 }
0x1271   : > { %v2628_v7 = vsel %vm1019_vm0, %v4706_v51, %v3804_v6  ;;  %v2626_v43 = vsel %vm1019_vm0, %v4660_v35, %v3805_v3 }
0x1272   : > { %2844 = vmatprep.mubr.f32.mxu0 %v2628_v7 }
0x1273   : > { %2845 = vmatmul.mubr.f32.gmra.mrb[30].mxu0 %v2626_v43 }
0x1342   : > { %v3200_v0 = vpop.f32.mrb[28].mxu0 }
0x1343   : > { %v3201_v37 = vpop.f32.mrb[29].mxu0 }
0x1344   : > { %v3202_v8 = vadd.f32 %v3201_v37, %v3200_v0 }
0x1346   : > { %v2842_v53 = vadd.f32 %v3202_v8, %v2767_v45  ;;  %v3203_v11 = vpop.f32.mrb[30].mxu0 }
0x1347   : > { %v3204_v51 = vpop.f32.mrb[31].mxu0 }
0x1348   : > { %2850 = vst [vmem:[%s352_s12] sm:$0xff] %v2842_v53  ;;  %v3205_v35 = vadd.f32 %v3204_v51, %v3203_v11 }
0x134a   : > { %v2847_v12 = vadd.f32 %v3205_v35, %v2772_v36 }
0x134c   : > { %2851 = vst [vmem:[%s352_s12 + $0x8] sm:$0xff] %v2847_v12 }
0x134d   : > { %4027 = shalt.err (!%p4024_p3)
}
0x134e   : > { %s4028_s18 = scalar_lea.hbm %s4762_s3, 256  ;;  %s4032_s29 = scalar_lea.hbm %s4812_s6, 512 }
0x134f   : > { %p4029_p9 = scmp.ne.s32.totalorder %s4762_s3, %s4028_s18  ;;  %p4033_p7 = scmp.lt.u32.totalorder %s4762_s3, %s4812_s6 }
0x1350   : > { %p4034_p12 = scmp.lt.u32.totalorder %s4032_s29, %s4028_s18  ;;  %p4036_p1 = scmp.lt.u32.totalorder %s4028_s18, %s4762_s3 }
0x1351   : > { %p4030_p13 = pnand %p4029_p9, %p4290_p5 }
0x1352   : > { %p4035_p2 = por %p4034_p12, %p4033_p7 }
0x1353   : > { %p4031_p11 = pneg %p4030_p13 }
0x1354   : > { %p4037_p4 = por %p4036_p1, %p4035_p2 }
0x1356   : > { %p4038_p0 = pnand %p4037_p4, %p4031_p11 }
0x1358   : > { %4041 = shalt.err (!%p4038_p0)
}
0x1359   : > { %s4108_s27 = smov 128   ;;  %s4109_s4 = smov 8  }
0x135a   : > { %3670 = dma.vmem_to_hbm [thread:$0]  (%p4290_p5), %s4757_s10, 256, %s4762_s3, %s2853_s11, %s4108_s27, %s4108_s27, %s4109_s4  }
0x135b PF: > { %s2881_s9 = sand.u32 1, %s4080_s21   ;;  %p4847_p8 = scmp.ne.s32.totalorder %s4825_s28, 0 }
0x135c   : > { %p4848_p6 = scmp.ge.s32.totalorder %s4092_s24, 2  ;;  %s2882_s12 = scalar_lea.sflag [#allocation4], %s2881_s9 }
0x135e   : > { %p3690_p10 = pnand %p4848_p6, %p4847_p8 }
0x1360   : > { %4075 = dma.done.wait (!%p3690_p10), %s2882_s12, 256  }
0x1361   : > { %4077 = vsyncadd (!%p3690_p10), %s2882_s12, 4294967040  ;;  %s4849_s14 = sld [smem:[#allocation17_spill]]  ;;  %p23_p3 = scmp.ge.s32.totalorder %s4276_s30, 4  }
0x1362   : > { %s4850_s21 = smov %s4084_s22  ;;  %s4851_s22 = smov %s4088_s23 }
0x1363   : > { %s4853_s24 = smov %s4276_s30  ;;  %25 = sbr.rel (!%p23_p3) target bundleno = 13 (0xd), region = 114 }
0x1367   : > { %s4852_s23 = smov %s4849_s14 }
0x136a   :  { %2887 = vsyncpa [#allocation3], 1 }
0x136b   :  { %2889 = vsyncpa [#allocation3 + $0x1], 1 }
0x136c   :  { %2890 = vsyncpa [#allocation6], 1 }
0x136d   :  { %2892 = vsyncpa [#allocation6 + $0x1], 1 }
0x136e   :  { %2893 = vsyncpa [#allocation9], 1 }
0x136f   :  { %2894 = vsyncpa [#allocation4], 1 }
0x1370   :  { %2896 = vsyncpa [#allocation4 + $0x1], 1 }

</bundles_post_ra>
